<compile_context>
chip_gen: v6e
topology: v6e:2x2x1
jax: 0.10.0
libtpu: 0.0.40
codegen_flags: <defaults>
</compile_context>

<pallas_src>
from functools import partial
from math import sqrt

import jax
import jax.numpy as jnp
from jax import lax
from jax.experimental import pallas as pl
from jax.experimental.pallas import tpu as pltpu


# dtype of the conv matmul operands (accumulation is always f32 on the MXU).
MATMUL_DTYPE = jnp.bfloat16


# ---------------------------------------------------------------------------
# helpers that mirror the PyTorch module exactly
# ---------------------------------------------------------------------------
def get_groups(channels: int) -> int:
    divisors = []
    for i in range(1, int(sqrt(channels)) + 1):
        if channels % i == 0:
            divisors.append(i)
            other = channels // i
            if i != other:
                divisors.append(other)
    return sorted(divisors)[len(divisors) // 2]


def wn_standardize(w):
    """WNConv2d weight standardization.  w: (O, I, kh, kw), f32."""
    mean = jnp.mean(w, axis=(1, 2, 3), keepdims=True)
    w = w - mean
    # torch.Tensor.std defaults to unbiased (ddof=1)
    std = jnp.std(w.reshape(w.shape[0], -1), axis=1, ddof=1).reshape(-1, 1, 1, 1) + 1e-5
    return w / std


def round_up(x, m):
    return ((x + m - 1) // m) * m


def _vmem_limit_bytes():
    """~3/4 of physical VMEM (96 MiB on v5e/v6e, 48 MiB on v7x), capped."""
    cap = 128 * 1024 * 1024
    try:
        info = pltpu.get_tpu_info()
        for name in ("vmem_capacity_bytes", "vmem_size_bytes", "vmem_bytes"):
            v = getattr(info, name, None)
            if v:
                cap = int(v)
                break
    except Exception:
        pass
    return min((cap * 3) // 4, 100 * 1024 * 1024)


# ---------------------------------------------------------------------------
# Fused Pallas kernel: [conv3x3 (implicit GEMM, K=9*Cin) + bias + Swish + GN]
#                      -> in-VMEM reflection halo fill ->
#                      [conv3x3 (K=9*Cout) + bias + Swish + GN]
# One batch item per grid step.  Channel-major, lane-dense spatial layout.
#
# Lane layouts (per channel):
#   stage-1 input  x_ref : reflection-padded image, rows flattened with
#                          stride Wp=W+2, shifted right by Wp+1 lanes (host).
#   stage-1 output / stage-2 input : "padded-grid" layout, lane p = R*Wp + C,
#                          R in [0,H+2), C in [0,Wp); interior (R in 1..H,
#                          C in 1..W) holds real values, halos are rebuilt
#                          in-kernel by reflection, the rest is masked junk.
#   stage-2 output o_ref : lane q = r*Wp + c, r in [0,H), 2 junk cols per row
#                          plus the 128-rounding tail (stripped outside).
# ---------------------------------------------------------------------------
def fused_conv_block_kernel(x_ref, w1_ref, w2_ref, pp_ref, ggc_ref, gcg_ref,
                            mask_ref, o_ref, *, Wp, Q1p, Qc, P2, inv_cnt):
    Cout = o_ref.shape[1]
    offs = [kh * Wp + kw for kh in range(3) for kw in range(3)]

    pp = pp_ref[...]            # (Cout, 8) packed [b1, g1, be1, b2, g2, be2, 0, 0]
    masks = mask_ref[...]       # (8, Q1p) f32 packed masks (see make_masks)
    ggc = ggc_ref[...]          # (G, Cout) group-membership (0/1)
    gcg = gcg_ref[...]          # (Cout, G)

    def swish(y):
        # x * sigmoid(x); exp + approx reciprocal ride the EUP slot.
        return y * pl.reciprocal(1.0 + jnp.exp(-y), approx=True)

    def group_norm(y, m, gamma, beta):
        # y: (Cout, Q) f32, m: (1, Q) f32 selecting the H*W valid positions.
        ym = y * m
        s = jnp.sum(ym, axis=1, keepdims=True)                 # (Cout, 1)
        ss = jnp.sum(ym * y, axis=1, keepdims=True)            # (Cout, 1)
        sboth = jnp.concatenate([s, ss], axis=1)               # (Cout, 2)
        gsum = jnp.dot(ggc, sboth, preferred_element_type=jnp.float32)   # (G, 2)
        csum = jnp.dot(gcg, gsum, preferred_element_type=jnp.float32)    # (Cout, 2)
        mean = csum[:, 0:1] * inv_cnt                          # inv_cnt = 1/(Cg*H*W)
        var = jnp.maximum(csum[:, 1:2] * inv_cnt - mean * mean, 0.0)
        inv_std = lax.rsqrt(var + 1e-5)
        return (y - mean) * inv_std * gamma + beta

    # ----- stage 1: conv (single K=9*Cin dot) + bias + Swish + GroupNorm ----
    x_cat = jnp.concatenate([x_ref[0, :, pl.ds(o, Q1p)] for o in offs], axis=0)
    y1 = jnp.dot(w1_ref[...], x_cat, preferred_element_type=jnp.float32)
    y1 = swish(y1 + pp[:, 0:1])
    y1 = group_norm(y1, masks[0:1], pp[:, 1:2], pp[:, 2:3])
    y1 = y1.astype(MATMUL_DTYPE)

    # ----- in-VMEM reflection halo fill (ReflectionPad2d(1) for stage 2) ----
    def shift_left(v, k):    # out[:, q] = v[:, q + k]   (zeros at the tail)
        return jnp.concatenate([v[:, k:], jnp.zeros((v.shape[0], k), v.dtype)], axis=1)

    def shift_right(v, k):   # out[:, q] = v[:, q - k]   (zeros at the front)
        return jnp.concatenate([jnp.zeros((v.shape[0], k), v.dtype),
                                v[:, :v.shape[1] - k]], axis=1)

    p2 = jnp.where(masks[1:2] != 0, shift_left(y1, 2), y1)          # col 0   <- col 2
    p2 = jnp.where(masks[2:3] != 0, shift_right(p2, 2), p2)         # col W+1 <- col W-1
    top = jnp.where(masks[3:4] != 0, shift_left(p2, 2 * Wp), p2)    # row 0   <- row 2
    p2 = jnp.where(masks[4:5] != 0, shift_right(p2, 2 * Wp), top)   # row H+1 <- row H-1
    if P2 > Q1p:                                                    # tap-overhang tail
        p2 = jnp.concatenate(
            [p2, jnp.zeros((Cout, P2 - Q1p), p2.dtype)], axis=1)

    # ----- stage 2: conv (single K=9*Cout dot) + bias + Swish + GroupNorm ---
    x2_cat = jnp.concatenate([p2[:, o:o + Qc] for o in offs], axis=0)
    y2 = jnp.dot(w2_ref[...], x2_cat, preferred_element_type=jnp.float32)
    y2 = swish(y2 + pp[:, 3:4])
    y2 = group_norm(y2, masks[5:6, :Qc], pp[:, 4:5], pp[:, 5:6])

    o_ref[0] = y2.astype(o_ref.dtype)


# ---------------------------------------------------------------------------
# JAX-side glue (cheap, input/param prep only — no inter-stage traffic)
# ---------------------------------------------------------------------------
def prep_input(x_nchw, P):
    """NCHW -> reflection-padded, row-flattened, shifted by Wp+1, bf16 (N,C,P)."""
    N, C, H, W = x_nchw.shape
    Wp = W + 2
    xp = jnp.pad(x_nchw, ((0, 0), (0, 0), (1, 1), (1, 1)), mode="reflect")
    flat = xp.reshape(N, C, (H + 2) * Wp).astype(MATMUL_DTYPE)
    lead = Wp + 1
    return jnp.pad(flat, ((0, 0), (0, 0), (lead, P - (H + 2) * Wp - lead)))


def weights_cat(w_std):
    """standardized (O, I, 3, 3) -> (O, 9*I), column block t=kh*3+kw, bf16."""
    O, I = w_std.shape[0], w_std.shape[1]
    return jnp.transpose(w_std, (0, 2, 3, 1)).reshape(O, 9 * I).astype(MATMUL_DTYPE)


def make_group_mats(C, G):
    Cg = C // G
    gid = jnp.arange(C) // Cg
    ggc = (jnp.arange(G)[:, None] == gid[None, :]).astype(jnp.float32)   # (G, C)
    return ggc, ggc.T                                                    # (C, G)


def make_masks(H, W, Q1p):
    """(8, Q1p) f32: [GN1 interior, col==0, col==W+1, row==0, row==H+1, GN2, 0, 0]."""
    Wp = W + 2
    lane = jnp.arange(Q1p)
    row = lane // Wp
    col = lane % Wp
    in_grid = lane < (H + 2) * Wp
    m1 = in_grid & (row >= 1) & (row <= H) & (col >= 1) & (col <= W)
    c0 = in_grid & (col == 0)
    cw = in_grid & (col == W + 1)
    r0 = row == 0
    rh = in_grid & (row == H + 1)
    m2 = (lane < H * Wp) & (col < W)
    z = jnp.zeros_like(m1)
    return jnp.stack([m1, c0, cw, r0, rh, m2, z, z]).astype(jnp.float32)


# ---------------------------------------------------------------------------
# UNetConvBlock forward (padding=True, norm='group', kernel_size=3)
# ---------------------------------------------------------------------------
def unet_conv_block_forward(x_nchw, params):
    """x_nchw: (N, Cin, H, W) f32 -> (N, Cout, H, W) f32."""
    N, Cin, H, W = x_nchw.shape
    Cout = params["w1"].shape[0]
    G = get_groups(Cout)
    Cg = Cout // G
    Wp = W + 2

    Q1p = round_up((H + 2) * Wp, 128)          # stage-1 output lane extent
    Qc = round_up(H * Wp, 128)                 # stage-2 / stored output lane extent
    P = round_up(Q1p + 2 * Wp + 2, 128)        # stage-1 input lane extent
    P2 = round_up(Qc + 2 * Wp + 2, 128)        # stage-2 padded-input lane extent
    inv_cnt = 1.0 / (Cg * H * W)               # 1 / elements-per-group, compile-time

    x_flat = prep_input(x_nchw, P)                                   # (N, Cin, P) bf16
    w1c = weights_cat(wn_standardize(params["w1"]))                  # (Cout, 9*Cin)
    w2c = weights_cat(wn_standardize(params["w2"]))                  # (Cout, 9*Cout)
    zc = jnp.zeros((Cout,), jnp.float32)
    pp = jnp.stack([params["b1"], params["g1"], params["be1"],
                    params["b2"], params["g2"], params["be2"], zc, zc],
                   axis=1).astype(jnp.float32)                       # (Cout, 8)
    ggc, gcg = make_group_mats(Cout, G)
    masks = make_masks(H, W, Q1p)

    kernel = partial(fused_conv_block_kernel,
                     Wp=Wp, Q1p=Q1p, Qc=Qc, P2=P2, inv_cnt=inv_cnt)

    y = pl.pallas_call(
        kernel,
        out_shape=jax.ShapeDtypeStruct((N, Cout, Qc), jnp.float32),
        grid_spec=pltpu.PrefetchScalarGridSpec(
            num_scalar_prefetch=0,
            grid=(N,),
            in_specs=[
                pl.BlockSpec((1, Cin, P), lambda n: (n, 0, 0)),      # x (per item)
                pl.BlockSpec((Cout, 9 * Cin), lambda n: (0, 0)),     # w1
                pl.BlockSpec((Cout, 9 * Cout), lambda n: (0, 0)),    # w2
                pl.BlockSpec((Cout, 8), lambda n: (0, 0)),           # packed b/gamma/beta
                pl.BlockSpec((G, Cout), lambda n: (0, 0)),           # group agg matrix
                pl.BlockSpec((Cout, G), lambda n: (0, 0)),           # group bcast matrix
                pl.BlockSpec((8, Q1p), lambda n: (0, 0)),            # packed masks
            ],
            out_specs=pl.BlockSpec((1, Cout, Qc), lambda n: (n, 0, 0)),
        ),
        compiler_params=pltpu.CompilerParams(
            dimension_semantics=("parallel",),       # megacore batch sharding
            vmem_limit_bytes=_vmem_limit_bytes(),
        ),
    )(x_flat, w1c, w2c, pp, ggc, gcg, masks)

    # strip: (N, Cout, Qc) -> (N, Cout, H, W) (drop junk cols + rounding tail)
    return y[:, :, :H * Wp].reshape(N, Cout, H, Wp)[:, :, :, :W]


# ---------------------------------------------------------------------------
# params, pure-JAX reference, and smoke test
# ---------------------------------------------------------------------------
def make_params(key, in_size, out_size):
    k = jax.random.split(key, 4)
    return {
        "w1": 0.1 * jax.random.normal(k[0], (out_size, in_size, 3, 3), jnp.float32),
        "b1": 0.1 * jax.random.normal(k[1], (out_size,), jnp.float32),
        "g1": jnp.ones((out_size,), jnp.float32),       # GroupNorm weight
        "be1": jnp.zeros((out_size,), jnp.float32),     # GroupNorm bias
        "w2": 0.1 * jax.random.normal(k[2], (out_size, out_size, 3, 3), jnp.float32),
        "b2": 0.1 * jax.random.normal(k[3], (out_size,), jnp.float32),
        "g2": jnp.ones((out_size,), jnp.float32),
        "be2": jnp.zeros((out_size,), jnp.float32),
    }


def reference_forward(x, params):
    """Pure-JAX f32 reference of the PyTorch module (sanity check only)."""
    def stage(x, w, b, gamma, beta):
        w = wn_standardize(w)
        xp = jnp.pad(x, ((0, 0), (0, 0), (1, 1), (1, 1)), mode="reflect")
        y = lax.conv_general_dilated(
            xp, w, (1, 1), "VALID",
            dimension_numbers=("NCHW", "OIHW", "NCHW")) + b.reshape(1, -1, 1, 1)
        y = y * jax.nn.sigmoid(y)
        N, C, H, W = y.shape
        G = get_groups(C)
        yg = y.reshape(N, G, C // G, H, W)
        mean = yg.mean(axis=(2, 3, 4), keepdims=True)
        var = yg.var(axis=(2, 3, 4), keepdims=True)
        yn = ((yg - mean) / jnp.sqrt(var + 1e-5)).reshape(N, C, H, W)
        return yn * gamma.reshape(1, -1, 1, 1) + beta.reshape(1, -1, 1, 1)

    y = stage(x, params["w1"], params["b1"], params["g1"], params["be1"])
    return stage(y, params["w2"], params["b2"], params["g2"], params["be2"])


if __name__ == "__main__":
    key = jax.random.PRNGKey(0)
    k_x, k_p = jax.random.split(key)

    N, Cin, H, W = 2, 4, 16, 16
    Cout = 8  # out_size

    x = jax.random.normal(k_x, (N, Cin, H, W), jnp.float32)
    params = make_params(k_p, Cin, Cout)

    out = jax.jit(unet_conv_block_forward)(x, params)
    out = jax.block_until_ready(out)

    assert out.shape == (N, Cout, H, W), out.shape
    assert bool(jnp.all(jnp.isfinite(out)))

    # Loose tolerances: conv operands are deliberately bf16 (f32 accumulation)
    # and Swish uses the EUP approx reciprocal.
    ref = reference_forward(x, params)
    max_err = float(jnp.max(jnp.abs(out - ref)))
    mean_err = float(jnp.mean(jnp.abs(out - ref)))
    assert max_err < 0.3 and mean_err < 0.06, (max_err, mean_err)

    print("KERNEL_OK")
</pallas_src>

<mosaic_0001>
module attributes {stable_mosaic.version = 11 : i64} {
  func.func @fused_conv_block_kernel(%arg0: i32, %arg1: memref<1x4x512xbf16, #tpu.memory_space<vmem>>, %arg2: memref<8x36xbf16, #tpu.memory_space<vmem>>, %arg3: memref<8x72xbf16, #tpu.memory_space<vmem>>, %arg4: memref<8x8xf32, #tpu.memory_space<vmem>>, %arg5: memref<4x8xf32, #tpu.memory_space<vmem>>, %arg6: memref<8x4xf32, #tpu.memory_space<vmem>>, %arg7: memref<8x384xf32, #tpu.memory_space<vmem>>, %arg8: memref<1x8x384xf32, #tpu.memory_space<vmem>>) attributes {dimension_semantics = [#tpu.dimension_semantics<parallel>], iteration_bounds = array<i64: 2>, scalar_prefetch = 0 : i64, scratch_operands = 0 : i64, tpu.core_type = #tpu.core_type<tc>, window_params = [{transform_indices = @transform_0, window_bounds = array<i64: 1, 4, 512>}, {pipeline_mode = #tpu.pipeline_mode<synchronous>, transform_indices = @transform_1, window_bounds = array<i64: 8, 36>}, {pipeline_mode = #tpu.pipeline_mode<synchronous>, transform_indices = @transform_2, window_bounds = array<i64: 8, 72>}, {pipeline_mode = #tpu.pipeline_mode<synchronous>, transform_indices = @transform_3, window_bounds = array<i64: 8, 8>}, {pipeline_mode = #tpu.pipeline_mode<synchronous>, transform_indices = @transform_4, window_bounds = array<i64: 4, 8>}, {pipeline_mode = #tpu.pipeline_mode<synchronous>, transform_indices = @transform_5, window_bounds = array<i64: 8, 4>}, {pipeline_mode = #tpu.pipeline_mode<synchronous>, transform_indices = @transform_6, window_bounds = array<i64: 8, 384>}, {transform_indices = @transform_7, window_bounds = array<i64: 1, 8, 384>}]} {
    %c0 = arith.constant 0 : index
    %c0_0 = arith.constant 0 : index
    %0 = vector.load %arg4[%c0, %c0_0] : memref<8x8xf32, #tpu.memory_space<vmem>>, vector<8x8xf32>
    %c0_1 = arith.constant 0 : index
    %c0_2 = arith.constant 0 : index
    %1 = vector.load %arg7[%c0_1, %c0_2] : memref<8x384xf32, #tpu.memory_space<vmem>>, vector<8x384xf32>
    %c0_3 = arith.constant 0 : index
    %c0_4 = arith.constant 0 : index
    %2 = vector.load %arg5[%c0_3, %c0_4] : memref<4x8xf32, #tpu.memory_space<vmem>>, vector<4x8xf32>
    %c0_5 = arith.constant 0 : index
    %c0_6 = arith.constant 0 : index
    %3 = vector.load %arg6[%c0_5, %c0_6] : memref<8x4xf32, #tpu.memory_space<vmem>>, vector<8x4xf32>
    %c0_7 = arith.constant 0 : index
    %c0_8 = arith.constant 0 : index
    %c0_9 = arith.constant 0 : index
    %4 = vector.load %arg1[%c0_7, %c0_8, %c0_9] : memref<1x4x512xbf16, #tpu.memory_space<vmem>>, vector<1x4x384xbf16>
    %5 = vector.shape_cast %4 : vector<1x4x384xbf16> to vector<4x384xbf16>
    %c0_10 = arith.constant 0 : index
    %c0_11 = arith.constant 0 : index
    %c1 = arith.constant 1 : index
    %6 = vector.load %arg1[%c0_10, %c0_11, %c1] : memref<1x4x512xbf16, #tpu.memory_space<vmem>>, vector<1x4x384xbf16>
    %7 = vector.shape_cast %6 : vector<1x4x384xbf16> to vector<4x384xbf16>
    %c0_12 = arith.constant 0 : index
    %c0_13 = arith.constant 0 : index
    %c2 = arith.constant 2 : index
    %8 = vector.load %arg1[%c0_12, %c0_13, %c2] : memref<1x4x512xbf16, #tpu.memory_space<vmem>>, vector<1x4x384xbf16>
    %9 = vector.shape_cast %8 : vector<1x4x384xbf16> to vector<4x384xbf16>
    %c0_14 = arith.constant 0 : index
    %c0_15 = arith.constant 0 : index
    %c18 = arith.constant 18 : index
    %10 = vector.load %arg1[%c0_14, %c0_15, %c18] : memref<1x4x512xbf16, #tpu.memory_space<vmem>>, vector<1x4x384xbf16>
    %11 = vector.shape_cast %10 : vector<1x4x384xbf16> to vector<4x384xbf16>
    %c0_16 = arith.constant 0 : index
    %c0_17 = arith.constant 0 : index
    %c19 = arith.constant 19 : index
    %12 = vector.load %arg1[%c0_16, %c0_17, %c19] : memref<1x4x512xbf16, #tpu.memory_space<vmem>>, vector<1x4x384xbf16>
    %13 = vector.shape_cast %12 : vector<1x4x384xbf16> to vector<4x384xbf16>
    %c0_18 = arith.constant 0 : index
    %c0_19 = arith.constant 0 : index
    %c20 = arith.constant 20 : index
    %14 = vector.load %arg1[%c0_18, %c0_19, %c20] : memref<1x4x512xbf16, #tpu.memory_space<vmem>>, vector<1x4x384xbf16>
    %15 = vector.shape_cast %14 : vector<1x4x384xbf16> to vector<4x384xbf16>
    %c0_20 = arith.constant 0 : index
    %c0_21 = arith.constant 0 : index
    %c36 = arith.constant 36 : index
    %16 = vector.load %arg1[%c0_20, %c0_21, %c36] : memref<1x4x512xbf16, #tpu.memory_space<vmem>>, vector<1x4x384xbf16>
    %17 = vector.shape_cast %16 : vector<1x4x384xbf16> to vector<4x384xbf16>
    %c0_22 = arith.constant 0 : index
    %c0_23 = arith.constant 0 : index
    %c37 = arith.constant 37 : index
    %18 = vector.load %arg1[%c0_22, %c0_23, %c37] : memref<1x4x512xbf16, #tpu.memory_space<vmem>>, vector<1x4x384xbf16>
    %19 = vector.shape_cast %18 : vector<1x4x384xbf16> to vector<4x384xbf16>
    %c0_24 = arith.constant 0 : index
    %c0_25 = arith.constant 0 : index
    %c38 = arith.constant 38 : index
    %20 = vector.load %arg1[%c0_24, %c0_25, %c38] : memref<1x4x512xbf16, #tpu.memory_space<vmem>>, vector<1x4x384xbf16>
    %21 = vector.shape_cast %20 : vector<1x4x384xbf16> to vector<4x384xbf16>
    %22 = tpu.concatenate %5, %7, %9, %11, %13, %15, %17, %19, %21 in 0 : vector<4x384xbf16>, vector<4x384xbf16>, vector<4x384xbf16>, vector<4x384xbf16>, vector<4x384xbf16>, vector<4x384xbf16>, vector<4x384xbf16>, vector<4x384xbf16>, vector<4x384xbf16> -> vector<36x384xbf16>
    %c0_26 = arith.constant 0 : index
    %c0_27 = arith.constant 0 : index
    %23 = vector.load %arg2[%c0_26, %c0_27] : memref<8x36xbf16, #tpu.memory_space<vmem>>, vector<8x36xbf16>
    %cst = arith.constant dense<0.000000e+00> : vector<8x384xf32>
    %24 = tpu.matmul %23, %22, %cst {dimension_numbers = #tpu.dot_dimension_numbers<[1], [0], [0], [1], [0, 0, 1, 1], [], []>} : vector<8x36xbf16>, vector<36x384xbf16>, vector<8x384xf32> -> vector<8x384xf32>
    %25 = vector.extract_strided_slice %0 {offsets = [0, 0], sizes = [8, 1], strides = [1, 1]} : vector<8x8xf32> to vector<8x1xf32>
    %26 = vector.broadcast %25 : vector<8x1xf32> to vector<8x384xf32>
    %27 = arith.addf %24, %26 : vector<8x384xf32>
    %cst_28 = arith.constant 0.000000e+00 : f32
    %28 = vector.broadcast %cst_28 : f32 to vector<8x384xf32>
    %29 = arith.subf %28, %27 : vector<8x384xf32>
    %30 = math.exp %29 : vector<8x384xf32>
    %cst_29 = arith.constant 1.000000e+00 : f32
    %31 = vector.broadcast %cst_29 : f32 to vector<8x384xf32>
    %32 = arith.addf %31, %30 : vector<8x384xf32>
    %33 = tpu.reciprocal %32 {approx = true} : vector<8x384xf32> -> vector<8x384xf32>
    %34 = arith.mulf %27, %33 : vector<8x384xf32>
    %35 = vector.extract_strided_slice %1 {offsets = [0, 0], sizes = [1, 384], strides = [1, 1]} : vector<8x384xf32> to vector<1x384xf32>
    %36 = vector.extract_strided_slice %0 {offsets = [0, 1], sizes = [8, 1], strides = [1, 1]} : vector<8x8xf32> to vector<8x1xf32>
    %37 = vector.extract_strided_slice %0 {offsets = [0, 2], sizes = [8, 1], strides = [1, 1]} : vector<8x8xf32> to vector<8x1xf32>
    %38 = vector.broadcast %35 : vector<1x384xf32> to vector<8x384xf32>
    %39 = arith.mulf %34, %38 : vector<8x384xf32>
    %cst_30 = arith.constant dense<0.000000e+00> : vector<8xf32>
    %40 = vector.multi_reduction <add>, %39, %cst_30 [1] : vector<8x384xf32> to vector<8xf32>
    %41 = vector.shape_cast %40 : vector<8xf32> to vector<8x1xf32>
    %42 = arith.mulf %39, %34 : vector<8x384xf32>
    %cst_31 = arith.constant dense<0.000000e+00> : vector<8xf32>
    %43 = vector.multi_reduction <add>, %42, %cst_31 [1] : vector<8x384xf32> to vector<8xf32>
    %44 = vector.shape_cast %43 : vector<8xf32> to vector<8x1xf32>
    %45 = tpu.concatenate %41, %44 in 1 : vector<8x1xf32>, vector<8x1xf32> -> vector<8x2xf32>
    %cst_32 = arith.constant dense<0.000000e+00> : vector<4x2xf32>
    %46 = tpu.matmul %2, %45, %cst_32 {dimension_numbers = #tpu.dot_dimension_numbers<[1], [0], [0], [1], [0, 0, 1, 1], [], []>} : vector<4x8xf32>, vector<8x2xf32>, vector<4x2xf32> -> vector<4x2xf32>
    %cst_33 = arith.constant dense<0.000000e+00> : vector<8x2xf32>
    %47 = tpu.matmul %3, %46, %cst_33 {dimension_numbers = #tpu.dot_dimension_numbers<[1], [0], [0], [1], [0, 0, 1, 1], [], []>} : vector<8x4xf32>, vector<4x2xf32>, vector<8x2xf32> -> vector<8x2xf32>
    %48 = vector.extract_strided_slice %47 {offsets = [0, 0], sizes = [8, 1], strides = [1, 1]} : vector<8x2xf32> to vector<8x1xf32>
    %cst_34 = arith.constant 0.001953125 : f32
    %49 = vector.broadcast %cst_34 : f32 to vector<8x1xf32>
    %50 = arith.mulf %48, %49 : vector<8x1xf32>
    %51 = vector.extract_strided_slice %47 {offsets = [0, 1], sizes = [8, 1], strides = [1, 1]} : vector<8x2xf32> to vector<8x1xf32>
    %cst_35 = arith.constant 0.001953125 : f32
    %52 = vector.broadcast %cst_35 : f32 to vector<8x1xf32>
    %53 = arith.mulf %51, %52 : vector<8x1xf32>
    %54 = arith.mulf %50, %50 : vector<8x1xf32>
    %55 = arith.subf %53, %54 : vector<8x1xf32>
    %cst_36 = arith.constant 0.000000e+00 : f32
    %56 = vector.broadcast %cst_36 : f32 to vector<8x1xf32>
    %57 = arith.maximumf %55, %56 : vector<8x1xf32>
    %cst_37 = arith.constant 9.99999974E-6 : f32
    %58 = vector.broadcast %cst_37 : f32 to vector<8x1xf32>
    %59 = arith.addf %57, %58 : vector<8x1xf32>
    %60 = math.rsqrt %59 : vector<8x1xf32>
    %61 = vector.broadcast %50 : vector<8x1xf32> to vector<8x384xf32>
    %62 = arith.subf %34, %61 : vector<8x384xf32>
    %63 = vector.broadcast %60 : vector<8x1xf32> to vector<8x384xf32>
    %64 = arith.mulf %62, %63 : vector<8x384xf32>
    %65 = vector.broadcast %36 : vector<8x1xf32> to vector<8x384xf32>
    %66 = arith.mulf %64, %65 : vector<8x384xf32>
    %67 = vector.broadcast %37 : vector<8x1xf32> to vector<8x384xf32>
    %68 = arith.addf %66, %67 : vector<8x384xf32>
    %69 = arith.truncf %68 : vector<8x384xf32> to vector<8x384xbf16>
    %70 = vector.extract_strided_slice %1 {offsets = [1, 0], sizes = [1, 384], strides = [1, 1]} : vector<8x384xf32> to vector<1x384xf32>
    %cst_38 = arith.constant 0.000000e+00 : f32
    %71 = vector.broadcast %cst_38 : f32 to vector<1x384xf32>
    %72 = arith.cmpf one, %70, %71 : vector<1x384xf32>
    %73 = vector.extract_strided_slice %69 {offsets = [0, 2], sizes = [8, 382], strides = [1, 1]} : vector<8x384xbf16> to vector<8x382xbf16>
    %cst_39 = arith.constant 0.000000e+00 : bf16
    %74 = vector.broadcast %cst_39 : bf16 to vector<8x2xbf16>
    %75 = tpu.concatenate %73, %74 in 1 : vector<8x382xbf16>, vector<8x2xbf16> -> vector<8x384xbf16>
    %76 = vector.shape_cast %72 : vector<1x384xi1> to vector<1x384xi1>
    %77 = vector.broadcast %76 : vector<1x384xi1> to vector<8x384xi1>
    %78 = arith.select %77, %75, %69 : vector<8x384xi1>, vector<8x384xbf16>
    %79 = vector.extract_strided_slice %1 {offsets = [2, 0], sizes = [1, 384], strides = [1, 1]} : vector<8x384xf32> to vector<1x384xf32>
    %cst_40 = arith.constant 0.000000e+00 : f32
    %80 = vector.broadcast %cst_40 : f32 to vector<1x384xf32>
    %81 = arith.cmpf one, %79, %80 : vector<1x384xf32>
    %cst_41 = arith.constant 0.000000e+00 : bf16
    %82 = vector.broadcast %cst_41 : bf16 to vector<8x2xbf16>
    %83 = vector.extract_strided_slice %78 {offsets = [0, 0], sizes = [8, 382], strides = [1, 1]} : vector<8x384xbf16> to vector<8x382xbf16>
    %84 = tpu.concatenate %82, %83 in 1 : vector<8x2xbf16>, vector<8x382xbf16> -> vector<8x384xbf16>
    %85 = vector.shape_cast %81 : vector<1x384xi1> to vector<1x384xi1>
    %86 = vector.broadcast %85 : vector<1x384xi1> to vector<8x384xi1>
    %87 = arith.select %86, %84, %78 : vector<8x384xi1>, vector<8x384xbf16>
    %88 = vector.extract_strided_slice %1 {offsets = [3, 0], sizes = [1, 384], strides = [1, 1]} : vector<8x384xf32> to vector<1x384xf32>
    %cst_42 = arith.constant 0.000000e+00 : f32
    %89 = vector.broadcast %cst_42 : f32 to vector<1x384xf32>
    %90 = arith.cmpf one, %88, %89 : vector<1x384xf32>
    %91 = vector.extract_strided_slice %87 {offsets = [0, 36], sizes = [8, 348], strides = [1, 1]} : vector<8x384xbf16> to vector<8x348xbf16>
    %cst_43 = arith.constant 0.000000e+00 : bf16
    %92 = vector.broadcast %cst_43 : bf16 to vector<8x36xbf16>
    %93 = tpu.concatenate %91, %92 in 1 : vector<8x348xbf16>, vector<8x36xbf16> -> vector<8x384xbf16>
    %94 = vector.shape_cast %90 : vector<1x384xi1> to vector<1x384xi1>
    %95 = vector.broadcast %94 : vector<1x384xi1> to vector<8x384xi1>
    %96 = arith.select %95, %93, %87 : vector<8x384xi1>, vector<8x384xbf16>
    %97 = vector.extract_strided_slice %1 {offsets = [4, 0], sizes = [1, 384], strides = [1, 1]} : vector<8x384xf32> to vector<1x384xf32>
    %cst_44 = arith.constant 0.000000e+00 : f32
    %98 = vector.broadcast %cst_44 : f32 to vector<1x384xf32>
    %99 = arith.cmpf one, %97, %98 : vector<1x384xf32>
    %cst_45 = arith.constant 0.000000e+00 : bf16
    %100 = vector.broadcast %cst_45 : bf16 to vector<8x36xbf16>
    %101 = vector.extract_strided_slice %87 {offsets = [0, 0], sizes = [8, 348], strides = [1, 1]} : vector<8x384xbf16> to vector<8x348xbf16>
    %102 = tpu.concatenate %100, %101 in 1 : vector<8x36xbf16>, vector<8x348xbf16> -> vector<8x384xbf16>
    %103 = vector.shape_cast %99 : vector<1x384xi1> to vector<1x384xi1>
    %104 = vector.broadcast %103 : vector<1x384xi1> to vector<8x384xi1>
    %105 = arith.select %104, %102, %96 : vector<8x384xi1>, vector<8x384xbf16>
    %cst_46 = arith.constant 0.000000e+00 : bf16
    %106 = vector.broadcast %cst_46 : bf16 to vector<8x128xbf16>
    %107 = tpu.concatenate %105, %106 in 1 : vector<8x384xbf16>, vector<8x128xbf16> -> vector<8x512xbf16>
    %108 = vector.extract_strided_slice %107 {offsets = [0, 0], sizes = [8, 384], strides = [1, 1]} : vector<8x512xbf16> to vector<8x384xbf16>
    %109 = vector.extract_strided_slice %107 {offsets = [0, 1], sizes = [8, 384], strides = [1, 1]} : vector<8x512xbf16> to vector<8x384xbf16>
    %110 = vector.extract_strided_slice %107 {offsets = [0, 2], sizes = [8, 384], strides = [1, 1]} : vector<8x512xbf16> to vector<8x384xbf16>
    %111 = vector.extract_strided_slice %107 {offsets = [0, 18], sizes = [8, 384], strides = [1, 1]} : vector<8x512xbf16> to vector<8x384xbf16>
    %112 = vector.extract_strided_slice %107 {offsets = [0, 19], sizes = [8, 384], strides = [1, 1]} : vector<8x512xbf16> to vector<8x384xbf16>
    %113 = vector.extract_strided_slice %107 {offsets = [0, 20], sizes = [8, 384], strides = [1, 1]} : vector<8x512xbf16> to vector<8x384xbf16>
    %114 = vector.extract_strided_slice %107 {offsets = [0, 36], sizes = [8, 384], strides = [1, 1]} : vector<8x512xbf16> to vector<8x384xbf16>
    %115 = vector.extract_strided_slice %107 {offsets = [0, 37], sizes = [8, 384], strides = [1, 1]} : vector<8x512xbf16> to vector<8x384xbf16>
    %116 = vector.extract_strided_slice %107 {offsets = [0, 38], sizes = [8, 384], strides = [1, 1]} : vector<8x512xbf16> to vector<8x384xbf16>
    %117 = tpu.concatenate %108, %109, %110, %111, %112, %113, %114, %115, %116 in 0 : vector<8x384xbf16>, vector<8x384xbf16>, vector<8x384xbf16>, vector<8x384xbf16>, vector<8x384xbf16>, vector<8x384xbf16>, vector<8x384xbf16>, vector<8x384xbf16>, vector<8x384xbf16> -> vector<72x384xbf16>
    %c0_47 = arith.constant 0 : index
    %c0_48 = arith.constant 0 : index
    %118 = vector.load %arg3[%c0_47, %c0_48] : memref<8x72xbf16, #tpu.memory_space<vmem>>, vector<8x72xbf16>
    %cst_49 = arith.constant dense<0.000000e+00> : vector<8x384xf32>
    %119 = tpu.matmul %118, %117, %cst_49 {dimension_numbers = #tpu.dot_dimension_numbers<[1], [0], [0], [1], [0, 0, 1, 1], [], []>} : vector<8x72xbf16>, vector<72x384xbf16>, vector<8x384xf32> -> vector<8x384xf32>
    %120 = vector.extract_strided_slice %0 {offsets = [0, 3], sizes = [8, 1], strides = [1, 1]} : vector<8x8xf32> to vector<8x1xf32>
    %121 = vector.broadcast %120 : vector<8x1xf32> to vector<8x384xf32>
    %122 = arith.addf %119, %121 : vector<8x384xf32>
    %cst_50 = arith.constant 0.000000e+00 : f32
    %123 = vector.broadcast %cst_50 : f32 to vector<8x384xf32>
    %124 = arith.subf %123, %122 : vector<8x384xf32>
    %125 = math.exp %124 : vector<8x384xf32>
    %cst_51 = arith.constant 1.000000e+00 : f32
    %126 = vector.broadcast %cst_51 : f32 to vector<8x384xf32>
    %127 = arith.addf %126, %125 : vector<8x384xf32>
    %128 = tpu.reciprocal %127 {approx = true} : vector<8x384xf32> -> vector<8x384xf32>
    %129 = arith.mulf %122, %128 : vector<8x384xf32>
    %130 = vector.extract_strided_slice %1 {offsets = [5, 0], sizes = [1, 384], strides = [1, 1]} : vector<8x384xf32> to vector<1x384xf32>
    %131 = vector.extract_strided_slice %0 {offsets = [0, 4], sizes = [8, 1], strides = [1, 1]} : vector<8x8xf32> to vector<8x1xf32>
    %132 = vector.extract_strided_slice %0 {offsets = [0, 5], sizes = [8, 1], strides = [1, 1]} : vector<8x8xf32> to vector<8x1xf32>
    %133 = vector.broadcast %130 : vector<1x384xf32> to vector<8x384xf32>
    %134 = arith.mulf %129, %133 : vector<8x384xf32>
    %cst_52 = arith.constant dense<0.000000e+00> : vector<8xf32>
    %135 = vector.multi_reduction <add>, %134, %cst_52 [1] : vector<8x384xf32> to vector<8xf32>
    %136 = vector.shape_cast %135 : vector<8xf32> to vector<8x1xf32>
    %137 = arith.mulf %134, %129 : vector<8x384xf32>
    %cst_53 = arith.constant dense<0.000000e+00> : vector<8xf32>
    %138 = vector.multi_reduction <add>, %137, %cst_53 [1] : vector<8x384xf32> to vector<8xf32>
    %139 = vector.shape_cast %138 : vector<8xf32> to vector<8x1xf32>
    %140 = tpu.concatenate %136, %139 in 1 : vector<8x1xf32>, vector<8x1xf32> -> vector<8x2xf32>
    %cst_54 = arith.constant dense<0.000000e+00> : vector<4x2xf32>
    %141 = tpu.matmul %2, %140, %cst_54 {dimension_numbers = #tpu.dot_dimension_numbers<[1], [0], [0], [1], [0, 0, 1, 1], [], []>} : vector<4x8xf32>, vector<8x2xf32>, vector<4x2xf32> -> vector<4x2xf32>
    %cst_55 = arith.constant dense<0.000000e+00> : vector<8x2xf32>
    %142 = tpu.matmul %3, %141, %cst_55 {dimension_numbers = #tpu.dot_dimension_numbers<[1], [0], [0], [1], [0, 0, 1, 1], [], []>} : vector<8x4xf32>, vector<4x2xf32>, vector<8x2xf32> -> vector<8x2xf32>
    %143 = vector.extract_strided_slice %142 {offsets = [0, 0], sizes = [8, 1], strides = [1, 1]} : vector<8x2xf32> to vector<8x1xf32>
    %cst_56 = arith.constant 0.001953125 : f32
    %144 = vector.broadcast %cst_56 : f32 to vector<8x1xf32>
    %145 = arith.mulf %143, %144 : vector<8x1xf32>
    %146 = vector.extract_strided_slice %142 {offsets = [0, 1], sizes = [8, 1], strides = [1, 1]} : vector<8x2xf32> to vector<8x1xf32>
    %cst_57 = arith.constant 0.001953125 : f32
    %147 = vector.broadcast %cst_57 : f32 to vector<8x1xf32>
    %148 = arith.mulf %146, %147 : vector<8x1xf32>
    %149 = arith.mulf %145, %145 : vector<8x1xf32>
    %150 = arith.subf %148, %149 : vector<8x1xf32>
    %cst_58 = arith.constant 0.000000e+00 : f32
    %151 = vector.broadcast %cst_58 : f32 to vector<8x1xf32>
    %152 = arith.maximumf %150, %151 : vector<8x1xf32>
    %cst_59 = arith.constant 9.99999974E-6 : f32
    %153 = vector.broadcast %cst_59 : f32 to vector<8x1xf32>
    %154 = arith.addf %152, %153 : vector<8x1xf32>
    %155 = math.rsqrt %154 : vector<8x1xf32>
    %156 = vector.broadcast %145 : vector<8x1xf32> to vector<8x384xf32>
    %157 = arith.subf %129, %156 : vector<8x384xf32>
    %158 = vector.broadcast %155 : vector<8x1xf32> to vector<8x384xf32>
    %159 = arith.mulf %157, %158 : vector<8x384xf32>
    %160 = vector.broadcast %131 : vector<8x1xf32> to vector<8x384xf32>
    %161 = arith.mulf %159, %160 : vector<8x384xf32>
    %162 = vector.broadcast %132 : vector<8x1xf32> to vector<8x384xf32>
    %163 = arith.addf %161, %162 : vector<8x384xf32>
    %c0_60 = arith.constant 0 : index
    %c0_61 = arith.constant 0 : index
    %c0_62 = arith.constant 0 : index
    %164 = vector.load %arg8[%c0_60, %c0_61, %c0_62] : memref<1x8x384xf32, #tpu.memory_space<vmem>>, vector<1x8x384xf32>
    %165 = vector.shape_cast %164 : vector<1x8x384xf32> to vector<8x384xf32>
    %166 = vector.shape_cast %163 : vector<8x384xf32> to vector<1x8x384xf32>
    tpu.vector_store %arg8[%c0_60, %c0_61, %c0_62], %166 {strides = array<i32>} : memref<1x8x384xf32, #tpu.memory_space<vmem>>, vector<1x8x384xf32>,
    return
  }
  func.func @transform_0(%arg0: i32) -> (i32, i32, i32) {
    %c0_i32 = arith.constant 0 : i32
    %c0_i32_0 = arith.constant 0 : i32
    %c0_i32_1 = arith.constant 0 : i32
    return %arg0, %c0_i32, %c0_i32_0 : i32, i32, i32
  }
  func.func @transform_1(%arg0: i32) -> (i32, i32) {
    %c0_i32 = arith.constant 0 : i32
    %c0_i32_0 = arith.constant 0 : i32
    %c0_i32_1 = arith.constant 0 : i32
    return %c0_i32, %c0_i32_0 : i32, i32
  }
  func.func @transform_2(%arg0: i32) -> (i32, i32) {
    %c0_i32 = arith.constant 0 : i32
    %c0_i32_0 = arith.constant 0 : i32
    %c0_i32_1 = arith.constant 0 : i32
    return %c0_i32, %c0_i32_0 : i32, i32
  }
  func.func @transform_3(%arg0: i32) -> (i32, i32) {
    %c0_i32 = arith.constant 0 : i32
    %c0_i32_0 = arith.constant 0 : i32
    %c0_i32_1 = arith.constant 0 : i32
    return %c0_i32, %c0_i32_0 : i32, i32
  }
  func.func @transform_4(%arg0: i32) -> (i32, i32) {
    %c0_i32 = arith.constant 0 : i32
    %c0_i32_0 = arith.constant 0 : i32
    %c0_i32_1 = arith.constant 0 : i32
    return %c0_i32, %c0_i32_0 : i32, i32
  }
  func.func @transform_5(%arg0: i32) -> (i32, i32) {
    %c0_i32 = arith.constant 0 : i32
    %c0_i32_0 = arith.constant 0 : i32
    %c0_i32_1 = arith.constant 0 : i32
    return %c0_i32, %c0_i32_0 : i32, i32
  }
  func.func @transform_6(%arg0: i32) -> (i32, i32) {
    %c0_i32 = arith.constant 0 : i32
    %c0_i32_0 = arith.constant 0 : i32
    %c0_i32_1 = arith.constant 0 : i32
    return %c0_i32, %c0_i32_0 : i32, i32
  }
  func.func @transform_7(%arg0: i32) -> (i32, i32, i32) {
    %c0_i32 = arith.constant 0 : i32
    %c0_i32_0 = arith.constant 0 : i32
    %c0_i32_1 = arith.constant 0 : i32
    return %arg0, %c0_i32, %c0_i32_0 : i32, i32, i32
  }
}

</mosaic_0001>

<bundles_post_ra>
// kernel: unet_conv_block_forward.1
= control target key start
LH: loop header
LB: loop body
LE: loop exit
PB: predicated region body
PF: predicated region fallthrough
CT: control target
= control target key end

     0   :  { %s1797_s24 = smov 0   ;;  %s2202_s0 = inlined_call_operand.vmem [shape: bf16[2,4,512], index: 0, kind: input, shape index: {}]   ;;  %s2203_s1 = inlined_call_operand.vmem [shape: bf16[8,36], index: 1, kind: input, shape index: {}]   ;;  %s2204_s2 = inlined_call_operand.vmem [shape: bf16[8,72], index: 2, kind: input, shape index: {}]   ;;  %s2205_s3 = inlined_call_operand.vmem [shape: f32[8,8], index: 3, kind: input, shape index: {}]   ;;  %s2206_s4 = inlined_call_operand.vmem [shape: f32[4,8], index: 4, kind: input, shape index: {}]   ;;  %s2207_s5 = inlined_call_operand.vmem [shape: f32[8,4], index: 5, kind: input, shape index: {}]   ;;  %s2208_s6 = inlined_call_operand.vmem [shape: f32[8,384], index: 6, kind: input, shape index: {}]   ;;  %s2209_s7 = inlined_call_operand.vmem [shape: f32[2,8,384], index: 7, kind: output, shape index: {}]  }
   0x1 LB: > { %s1574_s25 = sadd.s32 4294967295, %s1735_s24   ;;  %p1578_p0 = scmp.ge.s32.totalorder %s1735_s24, 1  ;;  %s1735_s24 = sphi %s1797_s24, %s17_s24  }
   0x2   : > { %p237_p1 = scmp.lt.s32.totalorder %s1735_s24, 3 }
   0x4   : > { %p238_p2 = pnand %p1578_p0, %p237_p1 }
   0x5   : > { %p269_p3 = scmp.lt.s32.totalorder (!%p238_p2), %s1574_s25, 1  ;;  %s1738_s30 = smov (!%p238_p2), 90  }
   0x6   : > { %241 = sbr.rel (%p238_p2) target bundleno = 2809 (0xaf9), region = 48  ;;  %s1739_s8 = smov (!%p238_p2), 109  }
   0x7   : > { %s1740_s9 = smov (!%p238_p2), 108   ;;  %s1741_s10 = smov (!%p238_p2), 92  }
   0x8   : > { %s1743_s11 = smov (!%p238_p2), 91   ;;  %s1744_s12 = smov (!%p238_p2), 127  }
   0x9   : > { %s1745_s13 = smov (!%p238_p2), 126   ;;  %s1747_s14 = smov (!%p238_p2), 110  }
   0xa   : > { %s1750_s16 = smov (!%p238_p2), 1   ;;  %s1752_s17 = smov (!%p238_p2), 2  }
   0xb   : > { %v295_v0 = vlaneseq  ;;  %v1737_v1 = vmov 1983009808   ;;  %s2238_s25 = smov (!%p269_p3, %s1574_s25), 1  ;;  %v1742_v17 = vmov 0.0   ;;  %v1746_v23 = vmov 0   ;;  %v1857_v24 = vld [vmem:[%s2205_s3] sm:$0xff] }
   0xc   : > { %v293_v2 = vunpack.c.l.s4 %v1737_v1  ;;  %s1596_s26 = sshll.u32 %s2238_s25, 3  ;;  %1615 = vmatprep.subr.bf16.mxu1 %v1742_v17  ;;  %535 = vmatprep.mubr.bf16.mxu0 %v1746_v23  ;;  %vm2213_vm0 = vmmov 0   ;;  %vm429_vm1 = vcmask 736256   ;;  %vm433_vm2 = vcmask 1041408   ;;  %s1753_s18 = smov 36  }
   0xd   : > { %v1807_v3 = vshrl.u32 %v295_v0, 7  ;;  %s273_s29 = scalar_lea.vmem %s2202_s0, %s1596_s26  ;;  %1688 = vset.pattern.permute.xlu0 %v1746_v23  ;;  %1621 = vmatprep.mubr.msk.bf16.mxu1 %vm2213_vm0, %v1742_v17  ;;  %vm393_vm3 = vcmask 883712   ;;  %vm405_vm4 = vcmask 752640   ;;  %vm2218_vm5 = vcmask 891904  }
   0xe   : > { %v294_v4 = vunpack.c.0.s8 %v293_v2  ;;  %v289_v6 = vld [vmem:[%s273_s29] sm:$0xff]  ;;  %vm417_vm6 = vcmask 744448   ;;  %vm443_vm7 = vcmask 1043456   ;;  %vm450_vm8 = vcmask 1045504  }
   0xf   : > { %v337_v8 = vcombine.high %v289_v6, %v289_v6  ;;  %v308_v11 = vcombine.low %v289_v6, %v289_v6  ;;  %v288_v15 = vld [vmem:[%s273_s29] sm:$0x3f]  ;;  %vm2215_vm9 = vcmask 1039360   ;;  %vm2217_vm10 = vcmask 1031168  }
  0x10   : > { %v297_v5 = vsub.s32 %v294_v4, %v1807_v3  ;;  %v291_v21 = vcombine.high %v288_v15, %v288_v15  ;;  %vm2216_vm11 = vcmask 900096   ;;  %vm490_vm12 = vcmask 293888  }
  0x11   : > { %vm2212_vm13 = vcmask 7168   ;;  %vm2211_vm14 = vcmask 64512   ;;  %vm2210_vm15 = vcmask 31744  }
  0x12   : > { %v322_v7 = vrot.slane %v289_v6, %v297_v5  ;;  %v344_v9 = vrot.slane %v337_v8, %v297_v5  ;;  %v315_v12 = vrot.slane %v308_v11, %v297_v5  ;;  %v1825_v18 = vrot.slane %v288_v15, %v297_v5 }
  0x13   : > { %v1840_v22 = vrot.slane %v291_v21, %v297_v5 }
  0x14   : > { %421 = vrot.lane.b32.xlu0 %v322_v7, %s1738_s30  ;;  %v324_v10 = vcombine.high %v322_v7, %v322_v7  ;;  %425 = vrot.lane.b32.xlu1 %v344_v9, %s1738_s30  ;;  %v323_v13 = vcombine.high %v315_v12, %v315_v12  ;;  %v346_v14 = vcombine.low %v344_v9, %v344_v9 }
  0x15   : > { %v345_v16 = vcombine.low %v322_v7, %v322_v7  ;;  %v359_v19 = vcombine.low %v315_v12, %v315_v12  ;;  %v372_v20 = vcombine.high %v344_v9, %v344_v9  ;;  %v306_v4 = vcombine.high %v1825_v18, %v1825_v18 }
  0x18   : > { %423 = vrot.lane.b32.xlu0 %v324_v10, %s1738_s30  ;;  %375 = vrot.lane.b32.xlu1 %v324_v10, %s1739_s8 }
  0x1c   : > { %377 = vrot.lane.b32.xlu0 %v344_v9, %s1739_s8  ;;  %373 = vrot.lane.b32.xlu1 %v322_v7, %s1739_s8 }
  0x20   : > { %389 = vrot.lane.b32.xlu0 %v322_v7, %s1740_s9  ;;  %387 = vrot.lane.b32.xlu1 %v323_v13, %s1740_s9 }
  0x24   : > { %385 = vrot.lane.b32.xlu0 %v315_v12, %s1740_s9  ;;  %399 = vrot.lane.b32.xlu1 %v322_v7, %s1741_s10 }
  0x28   : > { %401 = vrot.lane.b32.xlu0 %v346_v14, %s1741_s10  ;;  %397 = vrot.lane.b32.xlu1 %v345_v16, %s1741_s10 }
  0x2c   : > { %411 = vrot.lane.b32.xlu0 %v315_v12, %s1743_s11  ;;  %413 = vrot.lane.b32.xlu1 %v345_v16, %s1743_s11 }
  0x30   : > { %409 = vrot.lane.b32.xlu0 %v359_v19, %s1743_s11  ;;  %427 = vrot.lane.b32.xlu1 %v372_v20, %s1738_s30 }
  0x34   : > { %327 = vrot.lane.b32.xlu0 %v323_v13, %s1744_s12  ;;  %329 = vrot.lane.b32.xlu1 %v322_v7, %s1744_s12 }
  0x38   : > { %325 = vrot.lane.b32.xlu0 %v315_v12, %s1744_s12  ;;  %349 = vrot.lane.b32.xlu1 %v322_v7, %s1745_s13 }
  0x3c   : > { %351 = vrot.lane.b32.xlu0 %v346_v14, %s1745_s13  ;;  %379 = vrot.lane.b32.xlu1 %v372_v20, %s1739_s8 }
  0x40   : > { %391 = vrot.lane.b32.xlu0 %v324_v10, %s1740_s9  ;;  %347 = vrot.lane.b32.xlu1 %v345_v16, %s1745_s13 }
  0x44   : > { %362 = vrot.lane.b32.xlu0 %v315_v12, %s1747_s14  ;;  %364 = vrot.lane.b32.xlu1 %v345_v16, %s1747_s14 }
  0x48   : > { %403 = vrot.lane.b32.xlu0 %v344_v9, %s1741_s10  ;;  %360 = vrot.lane.b32.xlu1 %v359_v19, %s1747_s14 }
  0x4c   : > { %415 = vrot.lane.b32.xlu0 %v322_v7, %s1743_s11  ;;  %331 = vrot.lane.b32.xlu1 %v324_v10, %s1744_s12 }
  0x50   : > { %353 = vrot.lane.b32.xlu0 %v344_v9, %s1745_s13  ;;  %366 = vrot.lane.b32.xlu1 %v322_v7, %s1747_s14 }
  0x54   : > { %487 = vperm.xlu0 %1688, %v1857_v24  }
  0x86   : > { %v422_v25 = vpop.permute.xlu0 %421  ;;  %v426_v26 = vpop.permute.xlu1 %425 }
  0x8a   : > { %v424_v27 = vpop.permute.xlu0 %423  ;;  %v376_v30 = vpop.permute.xlu1 %375 }
  0x8b   : > { %v431_v28 = vsel %vm429_vm1, %v424_v27, %v426_v26  ;;  %v430_v29 = vsel %vm429_vm1, %v422_v25, %v424_v27 }
  0x8c   : > { %1582 = vmatprep.subr.msk.bf16.mxu0 %vm433_vm2, %v431_v28  ;;  %v495_v31 = vsel %vm433_vm2, %v430_v29, 0 }
  0x8d   : > { %514 = vmatpush1.bf16.msra.mxu0 %v495_v31 }
  0x8e   : > { %v1865_v32 = vpop.permute.xlu0 %377  ;;  %v374_v33 = vpop.permute.xlu1 %373 }
  0x8f   : > { %v383_v43 = vsel %vm2218_vm5, %v376_v30, %v1865_v32  ;;  %v382_v48 = vsel %vm2218_vm5, %v374_v33, %v376_v30 }
  0x92   : > { %v390_v34 = vpop.permute.xlu0 %389  ;;  %v388_v35 = vpop.permute.xlu1 %387 }
  0x93   : > { %v395_v40 = vsel %vm393_vm3, %v388_v35, %v390_v34 }
  0x94   : > { %v465_v45 = vsel %vm433_vm2, %v383_v43, %v395_v40 }
  0x96   : > { %v386_v36 = vpop.permute.xlu0 %385  ;;  %v400_v37 = vpop.permute.xlu1 %399 }
  0x97   : > { %v394_v44 = vsel %vm393_vm3, %v386_v36, %v388_v35 }
  0x98   : > { %v462_v51 = vsel %vm433_vm2, %v382_v48, %v394_v44 }
  0x9a   : > { %v402_v38 = vpop.permute.xlu0 %401  ;;  %v398_v39 = vpop.permute.xlu1 %397 }
  0x9b   : > { %v407_v41 = vsel %vm405_vm4, %v400_v37, %v402_v38  ;;  %v406_v46 = vsel %vm405_vm4, %v398_v39, %v400_v37 }
  0x9c   : > { %v472_v50 = vsel %vm443_vm7, %v465_v45, %v407_v41  ;;  %v470_v55 = vsel %vm443_vm7, %v462_v51, %v406_v46 }
  0x9e   : > { %v412_v42 = vpop.permute.xlu0 %411  ;;  %v414_v47 = vpop.permute.xlu1 %413 }
  0x9f   : > { %v419_v49 = vsel %vm417_vm6, %v412_v42, %v414_v47 }
  0xa0   : > { %v479_v53 = vsel %vm450_vm8, %v472_v50, %v419_v49 }
  0xa1   : > { %515 = vmatprep.subr.bf16.mxu0 %v479_v53 }
  0xa2   : > { %v410_v52 = vpop.permute.xlu0 %409  ;;  %v428_v56 = vpop.permute.xlu1 %427 }
  0xa3   : > { %v418_v54 = vsel %vm417_vm6, %v410_v52, %v412_v42  ;;  %v432_v58 = vsel %vm429_vm1, %v426_v26, %v428_v56 }
  0xa4   : > { %v476_v57 = vsel %vm450_vm8, %v470_v55, %v418_v54  ;;  %v501_v60 = vsel %vm433_vm2, %v432_v58, 0 }
  0xa5   : > { %516 = vmatpush1.bf16.msra.mxu0 %v476_v57  ;;  %1616 = vmatpush3.bf16.msra.mxu1 %v501_v60 }
  0xa6   : > { %v328_v59 = vpop.permute.xlu0 %327  ;;  %v330_v61 = vpop.permute.xlu1 %329  ;;  %1617 = vmatprep.subr.bf16.mxu1 %v1742_v17 }
  0xa7   : > { %v335_v6 = vsel %vm2215_vm9, %v328_v59, %v330_v61 }
  0xa8   : > { %v439_v9 = vsel %vm433_vm2, %v306_v4, %v335_v6  ;;  %v1930_v4 = vld [vmem:[%s2208_s6 + $0x8] sm:$0xff] }
  0xaa   : > { %v326_v62 = vpop.permute.xlu0 %325  ;;  %v350_v63 = vpop.permute.xlu1 %349 }
  0xab   : > { %v334_v11 = vsel %vm2215_vm9, %v326_v62, %v328_v59 }
  0xac   : > { %v436_v20 = vsel %vm433_vm2, %v1825_v18, %v334_v11 }
  0xae   : > { %v352_v0 = vpop.permute.xlu0 %351  ;;  %v380_v1 = vpop.permute.xlu1 %379 }
  0xaf   : > { %v357_v7 = vsel %vm2217_vm10, %v350_v63, %v352_v0  ;;  %v384_v26 = vsel %vm2218_vm5, %v1865_v32, %v380_v1 }
  0xb0   : > { %v447_v13 = vsel %vm443_vm7, %v439_v9, %v357_v7  ;;  %v1938_v7 = vld [vmem:[%s2208_s6] sm:$0xff] }
  0xb2   : > { %v392_v2 = vpop.permute.xlu0 %391  ;;  %v348_v5 = vpop.permute.xlu1 %347 }
  0xb3   : > { %v356_v14 = vsel %vm2217_vm10, %v348_v5, %v350_v63  ;;  %v396_v19 = vsel %vm393_vm3, %v390_v34, %v392_v2  ;;  %v484_v34 = vld [vmem:[%s2203_s1] sm:$0xf]  ;;  %v1933_v5 = vsub.s32 0, %v1807_v3 }
  0xb4   : > { %v445_v28 = vsel %vm443_vm7, %v436_v20, %v356_v14  ;;  %v468_v29 = vsel %vm433_vm2, %v384_v26, %v396_v19 }
  0xb6   : > { %v363_v8 = vpop.permute.xlu0 %362  ;;  %v365_v10 = vpop.permute.xlu1 %364 }
  0xb7   : > { %v370_v12 = vsel %vm2216_vm11, %v363_v8, %v365_v10 }
  0xb8   : > { %v455_v16 = vsel %vm450_vm8, %v447_v13, %v370_v12  ;;  %v605_v12 = vrot.slane %v1938_v7, %v1933_v5  ;;  %v1947_v13 = vld [vmem:[%s2208_s6 + $0x10] sm:$0xff] }
  0xb9   : > { %517 = vmatprep.subr.bf16.mxu0 %v455_v16 }
  0xba   : > { %v404_v15 = vpop.permute.xlu0 %403  ;;  %v361_v25 = vpop.permute.xlu1 %360 }
  0xbb   : > { %v408_v21 = vsel %vm405_vm4, %v402_v38, %v404_v15  ;;  %v369_v27 = vsel %vm2216_vm11, %v361_v25, %v363_v8  ;;  %v609_v8 = vrot.slane %v1930_v4, %v1933_v5  ;;  %v613_v15 = vrot.slane %v1947_v13, %v1933_v5 }
  0xbc   : > { %v452_v31 = vsel %vm450_vm8, %v445_v28, %v369_v27  ;;  %v474_v18 = vsel %vm443_vm7, %v468_v29, %v408_v21 }
  0xbd   : > { %518 = vmatpush1.bf16.msra.mxu0 %v452_v31 }
  0xbe   : > { %v416_v30 = vpop.permute.xlu0 %415  ;;  %v332_v32 = vpop.permute.xlu1 %331  ;;  %1625 = vmatprep.subr.mxu0 %v1742_v17 }
  0xbf   : > { %v420_v33 = vsel %vm417_vm6, %v414_v47, %v416_v30  ;;  %v336_v36 = vsel %vm2215_vm9, %v330_v61, %v332_v32 }
  0xc0   : > { %v482_v35 = vsel %vm450_vm8, %v474_v18, %v420_v33  ;;  %v442_v37 = vsel %vm433_vm2, %v1840_v22, %v336_v36  ;;  %1583 = vmatmul.mubr.msk.bf16.vlgmr.msra.gmra.mxu0 %vm490_vm12, %v484_v34  ;;  %vm824_vm2 = vcmp.ne.f32.partialorder %v1938_v7, 0.0 }
  0xc1   : > { %1618 = vmatpush3.bf16.msra.mxu1 %v482_v35  ;;  %1627 = vmatprep.mubr.msk.f32.mxu0 %vm2213_vm0, %v1742_v17  ;;  %v1963_v35 = vld [vmem:[%s2207_s5] sm:$0xff] }
  0xc2   : > { %v354_v38 = vpop.permute.xlu0 %353  ;;  %1619 = vmatprep.subr.bf16.mxu1 %v1742_v17  ;;  %v367_v40 = vpop.permute.xlu1 %366 }
  0xc3   : > { %v358_v39 = vsel %vm2217_vm10, %v352_v0, %v354_v38  ;;  %v371_v42 = vsel %vm2216_vm11, %v365_v10, %v367_v40 }
  0xc4   : > { %v449_v41 = vsel %vm443_vm7, %v442_v37, %v358_v39  ;;  %v1749_v39 = vmov 1  }
  0xc5   : > { %v458_v43 = vsel %vm450_vm8, %v449_v41, %v371_v42  ;;  %1689 = vset.pattern.permute.xlu1 %v1749_v39  ;;  %vm825_vm8 = vcmp.ne.f32.partialorder %v1930_v4, 0.0 }
  0xc6   : > { %1620 = vmatpush3.bf16.msra.mxu1 %v458_v43  ;;  %v1751_v43 = vmov 2  }
  0xc7   : > { %1630 = vmatprep.subr.mxu1 %v1742_v17 }
  0xc9   : > { %1622 = vmatmul.mubr.msk.bf16.vlgmr.msra.gmra.mxu1 %vm490_vm12, %v484_v34  ;;  %v1954_v34 = vld [vmem:[%s2206_s4] sm:$0xf] }
  0xca   : > { %1632 = vmatprep.mubr.msk.f32.mxu1 %vm2213_vm0, %v1742_v17 }
  0xcf   : > { %v488_v22 = vpop.permute.xlu0 %487 }
 0x180   : > { %v537_v44 = vpop.f32.mrf.mxu0 }
 0x181   : > { %v538_v45 = vadd.f32 %v537_v44, %v488_v22 }
 0x182   : > { %v539_v46 = vpop.f32.mrf.mxu0 }
 0x183   : > { %v584_v47 = vsub.f32 0.0, %v538_v45  ;;  %v540_v48 = vadd.f32 %v539_v46, %v488_v22 }
 0x184   : > { %v541_v49 = vpop.f32.mrf.mxu0 }
 0x185   : > { %v587_v50 = vmul.f32 1.442695, %v584_v47  ;;  %v585_v51 = vsub.f32 0.0, %v540_v48 }
 0x186   : > { %v542_v52 = vpop.f32.mrf.mxu0 }
 0x187   : > { %1700 = vpow2.f32 %v587_v50  ;;  %v589_v53 = vmul.f32 1.442695, %v585_v51 }
 0x189   : > { %v578_v54 = vpop.f32.mrf.mxu1  ;;  %1702 = vpow2.f32 %v589_v53 }
 0x18a   : > { %v579_v55 = vadd.f32 %v578_v54, %v488_v22 }
 0x18b   : > { %v1623_v56 = vpop.f32.mrf.mxu1 }
 0x18c   : > { %v586_v57 = vsub.f32 0.0, %v579_v55 }
 0x18d   : > { %v581_v58 = vpop.f32.mrf.mxu1 }
 0x18e   : > { %v591_v59 = vmul.f32 1.442695, %v586_v57 }
 0x18f   : > { %v1624_v60 = vpop.f32.mrf.mxu1 }
 0x190   : > { %1704 = vpow2.f32 %v591_v59 }
 0x194   : > { %v1701_v61 = vpop.eup %1700 }
 0x195   : > { %v593_v62 = vadd.f32 1.0, %v1701_v61 }
 0x196   : > { %v1703_v63 = vpop.eup %1702 }
 0x197   : > { %1706 = vrcp.f32 %v593_v62  ;;  %v594_v0 = vadd.f32 1.0, %v1703_v63 }
 0x199   : > { %1708 = vrcp.f32 %v594_v0 }
 0x19d   : > { %v1705_v1 = vpop.eup %1704 }
 0x19e   : > { %v595_v2 = vadd.f32 1.0, %v1705_v1 }
 0x1a0   : > { %1710 = vrcp.f32 %v595_v2 }
 0x1a4   : > { %v1707_v6 = vpop.eup %1706 }
 0x1a5   : > { %v599_v10 = vmul.f32 %v1707_v6, %v538_v45  ;;  %v1981_v6 = vsel %vm824_vm2, 1, %v1746_v23 }
 0x1a6   : > { %v1709_v9 = vpop.eup %1708 }
 0x1a7   : > { %v600_v11 = vmul.f32 %v1709_v9, %v540_v48  ;;  %v614_v16 = vmul.f32 %v605_v12, %v599_v10  ;;  %v850_v9 = vsub.s32 1, %v1807_v3 }
 0x1a9   : > { %v615_v14 = vmul.f32 %v609_v8, %v600_v11  ;;  %v621_v27 = vmul.f32 %v614_v16, %v599_v10  ;;  %v1984_v8 = vsel %vm825_vm8, 1, %v1746_v23 }
 0x1ab   : > { %v622_v21 = vmul.f32 %v615_v14, %v600_v11  ;;  %v617_v26 = vadd.f32 %v615_v14, %v614_v16 }
 0x1ad   : > { %v1711_v19 = vpop.eup %1710  ;;  %v624_v30 = vadd.f32 %v622_v21, %v621_v27 }
 0x1ae   : > { %v601_v20 = vmul.f32 %v1711_v19, %v579_v55 }
 0x1b0   : > { %v616_v25 = vmul.f32 %v613_v15, %v601_v20  ;;  %v1995_v15 = vsub.s32 4, %v1807_v3 }
 0x1b2   : > { %v618_v28 = vadd.f32 %v617_v26, %v616_v25  ;;  %v623_v29 = vmul.f32 %v616_v25, %v601_v20 }
 0x1b4   : > { %619 = vadd.xlane.f32.xlu1 %v618_v28  ;;  %v625_v31 = vadd.f32 %v624_v30, %v623_v29 }
 0x1b6   : > { %626 = vadd.xlane.f32.xlu0 %v625_v31 }
 0x23d   : > { %v620_v33 = vpop.xlane.xlu1 %619 }
 0x23f   : > { %v627_v18 = vpop.xlane.xlu0 %626 }
 0x240   : > { %v629_v32 = vsel %vm2212_vm13, %v620_v33, %v627_v18 }
 0x241   : > { %1626 = vmatpush3.msra.mxu0 %v629_v32 }
 0x242   : > { %1628 = vmatmul.mubr.msk.f32.vlgmr.msra.gmra.mxu0 %vm2211_vm14, %v1954_v34 }
 0x243   : > { %1239 = vmatprep.mubr.bf16.mxu0 %v1746_v23 }
 0x302   : > { %v700_v36 = vpop.f32.mrf.mxu0 }
 0x303   : > { %1631 = vmatpush3.msk.msra.mxu1 %vm443_vm7, %v700_v36  ;;  %v905_v36 = vsub.s32 2, %v1807_v3 }
 0x304   : > { %v1629_v37 = vpop.f32.mrf.mxu0  ;;  %1633 = vmatmul.mubr.msk.f32.vlgmr.msra.gmra.mxu1 %vm2210_vm15, %v1963_v35  ;;  %1635 = vmatprep.subr.bf16.mxu1 %v1742_v17  ;;  %vm826_vm15 = vcmp.ne.f32.partialorder %v1947_v13, 0.0 }
 0x305   : > { %1645 = vmatprep.mubr.msk.bf16.mxu1 %vm2213_vm0, %v1742_v17  ;;  %v1991_v12 = vsel %vm826_vm15, 1, %v1746_v23  ;;  %v906_v37 = vrot.slane %v1981_v6, %v905_v36 }
 0x306   : > { %v859_v14 = vrot.slane %v1991_v12, %v850_v9 }
 0x308   : > { %vm862_vm0 = vcmp.eq.s32.totalorder %v859_v14, 1 }
 0x309   : > { %vm864_vm8 = vmpackc.low %vm862_vm0, %vm862_vm0 }
 0x30a   : > { %v866_v25 = vsel %vm864_vm8, 65537, %v1746_v23 }
 0x30b   : > { %v878_v26 = vrot.slane %v866_v25, %v1933_v5 }
 0x30d   : > { %vm881_vm0 = vcmp.ne.s16.totalorder %v878_v26, 0 }
 0x3c4   : > { %v777_v38 = vpop.f32.mrf.mxu1 }
 0x3c5   : > { %v781_v40 = vmul.f32 0.001953125, %v777_v38  ;;  %v910_v38 = vrot.slane %v1984_v8, %v905_v36 }
 0x3c6   : > { %v1634_v41 = vpop.f32.mrf.mxu1 }
 0x3c7   : > { %793 = vperm.xlu0 %1688, %v781_v40   ;;  %v782_v42 = vmul.f32 %v781_v40, %v781_v40 }
 0x3c9   : > { %784 = vrot.lane.b32.xlu1 %v782_v42, %s1750_s16 }
 0x3cb   : > { %1690 = vset.pattern.permute.xlu0 %v1751_v43 }
 0x3cc   : > { %815 = vperm.xlu0 %1690, %v1857_v24  }
 0x43b   : > { %v785_v22 = vpop.permute.xlu1 %784 }
 0x43c   : > { %v787_v44 = vsub.f32 %v781_v40, %v785_v22  ;;  %v914_v40 = vrot.slane %v1991_v12, %v905_v36 }
 0x43e   : > { %v788_v45 = vmax.f32 %v787_v44, 0.0 }
 0x440   : > { %v789_v46 = vadd.f32 1e-05, %v788_v45 }
 0x442   : > { %1712 = vrsqrt.f32 %v789_v46  ;;  %v794_v48 = vpop.permute.xlu0 %793 }
 0x443   : > { %v796_v50 = vsub.f32 %v599_v10, %v794_v48  ;;  %v797_v51 = vsub.f32 %v600_v11, %v794_v48  ;;  %v798_v52 = vsub.f32 %v601_v20, %v794_v48  ;;  %v851_v10 = vrot.slane %v1981_v6, %v850_v9 }
 0x444   : > { %v855_v11 = vrot.slane %v1984_v8, %v850_v9 }
 0x445   : > { %vm860_vm14 = vcmp.eq.s32.totalorder %v851_v10, 1 }
 0x446   : > { %vm861_vm13 = vcmp.eq.s32.totalorder %v855_v11, 1 }
 0x447   : > { %v816_v57 = vpop.permute.xlu0 %815  ;;  %vm863_vm2 = vmpackc.low %vm861_vm13, %vm860_vm14  ;;  %vm915_vm13 = vcmp.eq.s32.totalorder %v906_v37, 1  ;;  %vm916_vm14 = vcmp.eq.s32.totalorder %v910_v38, 1 }
 0x448   : > { %v865_v16 = vsel %vm863_vm2, 65537, %v1746_v23  ;;  %vm918_vm2 = vmpackc.low %vm916_vm14, %vm915_vm13 }
 0x449   : > { %v874_v19 = vrot.slane %v865_v16, %v1995_v15  ;;  %v870_v20 = vrot.slane %v865_v16, %v1933_v5  ;;  %v920_v41 = vsel %vm918_vm2, 65537, %v1746_v23 }
 0x44a   : > { %v925_v42 = vrot.slane %v920_v41, %v1933_v5  ;;  %v929_v43 = vrot.slane %v920_v41, %v1995_v15  ;;  %v1754_v41 = vmov 3  }
 0x44b   : > { %vm880_vm15 = vcmp.ne.s16.totalorder %v874_v19, 0  ;;  %vm879_vm9 = vcmp.ne.s16.totalorder %v870_v20, 0  ;;  %1691 = vset.pattern.permute.xlu0 %v1754_v41 }
 0x44c   : > { %vm935_vm11 = vcmp.ne.s16.totalorder %v929_v43, 0 }
 0x44f   : > { %v1713_v47 = vpop.eup %1712 }
 0x450   : > { %801 = vperm.xlu1 %1689, %v1713_v47  }
 0x454   : > { %808 = vperm.xlu1 %1689, %v1857_v24  }
 0x4cb   : > { %v802_v49 = vpop.permute.xlu1 %801 }
 0x4cc   : > { %v804_v53 = vmul.f32 %v802_v49, %v796_v50  ;;  %v805_v54 = vmul.f32 %v802_v49, %v797_v51  ;;  %v806_v55 = vmul.f32 %v802_v49, %v798_v52 }
 0x4cf   : > { %v809_v56 = vpop.permute.xlu1 %808 }
 0x4d0   : > { %v811_v58 = vmul.f32 %v809_v56, %v804_v53  ;;  %v812_v59 = vmul.f32 %v809_v56, %v805_v54  ;;  %v813_v60 = vmul.f32 %v809_v56, %v806_v55  ;;  %v2030_v54 = vrot.slane %v1746_v23, 4 }
 0x4d1   : > { %v959_v55 = vsub.s32 3, %v1807_v3 }
 0x4d2   : > { %v818_v61 = vadd.f32 %v816_v57, %v811_v58  ;;  %v820_v62 = vadd.f32 %v816_v57, %v813_v60  ;;  %v819_v63 = vadd.f32 %v816_v57, %v812_v59  ;;  %v1011_v58 = vrot.slane %v1981_v6, %v1995_v15 }
 0x4d3   : > { %v960_v56 = vrot.slane %v1981_v6, %v959_v55  ;;  %v964_v57 = vrot.slane %v1984_v8, %v959_v55  ;;  %v1015_v59 = vrot.slane %v1984_v8, %v1995_v15  ;;  %v968_v60 = vrot.slane %v1991_v12, %v959_v55 }
 0x4d4   : > { %v823_v0 = vpack.c.bf16 %v820_v62, %v820_v62  ;;  %v821_v1 = vpack.c.bf16 %v818_v61, %v818_v61  ;;  %v822_v2 = vpack.c.bf16 %v819_v63, %v819_v63  ;;  %vm1020_vm2 = vcmp.eq.s32.totalorder %v1011_v58, 1 }
 0x4d5   : > { %vm970_vm14 = vcmp.eq.s32.totalorder %v964_v57, 1  ;;  %v1019_v61 = vrot.slane %v1991_v12, %v1995_v15 }
 0x4d6   : > { %834 = vrot.lane.b32.xlu0 %v823_v0, %s1745_s13  ;;  %830 = vrot.lane.b32.xlu1 %v821_v1, %s1745_s13 }
 0x4da   : > { %832 = vrot.lane.b32.xlu1 %v822_v2, %s1745_s13 }
 0x548   : > { %v831_v21 = vpop.permute.xlu1 %830  ;;  %v835_v27 = vpop.permute.xlu0 %834 }
 0x549   : > { %v843_v18 = vsel %vm2217_vm10, %v835_v27, 0 }
 0x54a   : > { %v884_v32 = vsel %vm881_vm0, %v843_v18, %v823_v0  ;;  %vm934_vm0 = vcmp.ne.s16.totalorder %v925_v42, 0 }
 0x54c   : > { %v833_v28 = vpop.permute.xlu1 %832 }
 0x54d   : > { %v836_v29 = vsel %vm2217_vm10, %v831_v21, %v833_v28  ;;  %v837_v30 = vsel %vm2217_vm10, %v833_v28, %v835_v27 }
 0x54e   : > { %v883_v31 = vsel %vm880_vm15, %v837_v30, %v822_v2  ;;  %v882_v33 = vsel %vm879_vm9, %v836_v29, %v821_v1  ;;  %vm917_vm9 = vcmp.eq.s32.totalorder %v914_v40, 1  ;;  %vm894_vm15 = vcmask 15360  }
 0x54f   : > { %890 = vrot.lane.b32.xlu0 %v883_v31, %s1752_s17  ;;  %888 = vrot.lane.b32.xlu1 %v882_v33, %s1752_s17  ;;  %vm919_vm8 = vmpackc.low %vm917_vm9, %vm917_vm9  ;;  %vm1021_vm9 = vcmp.eq.s32.totalorder %v1015_v59, 1 }
 0x550   : > { %v921_v22 = vsel %vm919_vm8, 65537, %v1746_v23 }
 0x551   : > { %v933_v44 = vrot.slane %v921_v22, %v1933_v5 }
 0x553   : > { %892 = vrot.lane.b32.xlu1 %v884_v32, %s1752_s17  ;;  %vm936_vm13 = vcmp.ne.s16.totalorder %v933_v44, 0 }
 0x5c1   : > { %v891_v45 = vpop.permute.xlu0 %890  ;;  %v889_v46 = vpop.permute.xlu1 %888 }
 0x5c2   : > { %v895_v47 = vsel %vm894_vm15, %v889_v46, %v891_v45  ;;  %v901_v48 = vsel %vm894_vm15, 0, %v889_v46 }
 0x5c3   : > { %v937_v49 = vsel %vm934_vm0, %v901_v48, %v882_v33  ;;  %v2014_v50 = vsel %vm935_vm11, %v895_v47, %v883_v31  ;;  %vm969_vm11 = vcmp.eq.s32.totalorder %v960_v56, 1  ;;  %vm1023_vm0 = vmpackc.low %vm1021_vm9, %vm1020_vm2 }
 0x5c4   : > { %943 = vrot.lane.b32.xlu0 %v937_v49, %s1741_s10  ;;  %945 = vrot.lane.b32.xlu1 %v2014_v50, %s1741_s10  ;;  %vm972_vm8 = vmpackc.low %vm970_vm14, %vm969_vm11  ;;  %v1025_v63 = vsel %vm1023_vm0, 65537, %v1746_v23 }
 0x5c5   : > { %v893_v51 = vpop.permute.xlu1 %892  ;;  %v974_v62 = vsel %vm972_vm8, 65537, %v1746_v23  ;;  %v1030_v2 = vrot.slane %v1025_v63, %v1933_v5  ;;  %v1034_v14 = vrot.slane %v1025_v63, %v1995_v15 }
 0x5c6   : > { %v896_v52 = vsel %vm894_vm15, %v891_v45, %v893_v51  ;;  %vm971_vm15 = vcmp.eq.s32.totalorder %v968_v60, 1  ;;  %v979_v0 = vrot.slane %v974_v62, %v1933_v5  ;;  %v983_v10 = vrot.slane %v974_v62, %v1995_v15 }
 0x5c7   : > { %v2019_v53 = vsel %vm936_vm13, %v896_v52, %v884_v32  ;;  %vm1022_vm13 = vcmp.eq.s32.totalorder %v1019_v61, 1  ;;  %vm973_vm10 = vmpackc.low %vm971_vm15, %vm971_vm15  ;;  %vm1039_vm14 = vcmp.ne.s16.totalorder %v1030_v2, 0  ;;  %vm1040_vm2 = vcmp.ne.s16.totalorder %v1034_v14, 0 }
 0x5c8   : > { %994 = vrot.lane.b32.xlu1 %v937_v49, %s1753_s18  ;;  %947 = vrot.lane.b32.xlu0 %v2019_v53, %s1741_s10  ;;  %vm1024_vm5 = vmpackc.low %vm1022_vm13, %vm1022_vm13  ;;  %v975_v1 = vsel %vm973_vm10, 65537, %v1746_v23  ;;  %vm988_vm11 = vcmp.ne.s16.totalorder %v979_v0, 0  ;;  %vm2059_vm10 = vcmp.ne.s16.totalorder %v983_v10, 0  ;;  %vm2226_vm15 = vcmask 900096  }
 0x5c9   : > { %v1026_v9 = vsel %vm1024_vm5, 65537, %v1746_v23  ;;  %v987_v12 = vrot.slane %v975_v1, %v1933_v5  ;;  %vm2227_vm0 = vmmov %vm2226_vm15 }
 0x5ca   : > { %v1038_v16 = vrot.slane %v1026_v9, %v1933_v5 }
 0x5cb   : > { %vm990_vm5 = vcmp.ne.s16.totalorder %v987_v12, 0 }
 0x5cc   : > { %998 = vrot.lane.b32.xlu1 %v2019_v53, %s1753_s18  ;;  %996 = vrot.lane.b32.xlu0 %v2014_v50, %s1753_s18  ;;  %vm1041_vm9 = vcmp.ne.s16.totalorder %v1038_v16, 0 }
 0x5d0   : > { %1136 = vrot.lane.b32.xlu1 %v1746_v23, %s1738_s30  ;;  %1114 = vrot.lane.b32.xlu0 %v1746_v23, %s1741_s10 }
 0x5d4   : > { %1125 = vrot.lane.b32.xlu1 %v2030_v54, %s1743_s11  ;;  %1092 = vrot.lane.b32.xlu0 %v1746_v23, %s1739_s8 }
 0x5d8   : > { %1103 = vrot.lane.b32.xlu1 %v2030_v54, %s1740_s9 }
 0x636   : > { %v944_v6 = vpop.permute.xlu0 %943  ;;  %v946_v8 = vpop.permute.xlu1 %945 }
 0x637   : > { %v949_v11 = vsel %vm405_vm4, %v944_v6, %v946_v8 }
 0x638   : > { %v991_v21 = vsel %vm988_vm11, %v949_v11, %v937_v49  ;;  %vm1194_vm11 = vcmask 588800  }
 0x63a   : > { %v948_v19 = vpop.permute.xlu0 %947  ;;  %v995_v20 = vpop.permute.xlu1 %994 }
 0x63b   : > { %v1006_v26 = vsel %vm490_vm12, 0, %v995_v20  ;;  %v950_v27 = vsel %vm405_vm4, %v946_v8, %v948_v19  ;;  %v955_v28 = vsel %vm405_vm4, %v948_v19, 0 }
 0x63c   : > { %v2066_v29 = vsel %vm1039_vm14, %v1006_v26, %v991_v21  ;;  %v992_v30 = vsel %vm2059_vm10, %v950_v27, %v2014_v50  ;;  %v993_v31 = vsel %vm990_vm5, %v955_v28, %v2019_v53  ;;  %vm2231_vm10 = vmmov %vm2227_vm0 }
 0x63d   : > { %1130 = vrot.lane.b32.xlu0 %v2066_v29, %s1738_s30  ;;  %v1049_v40 = vrot.slane %v2066_v29, 4 }
 0x63e   : > { %v997_v5 = vpop.permute.xlu0 %996  ;;  %v999_v15 = vpop.permute.xlu1 %998 }
 0x63f   : > { %v1001_v33 = vsel %vm490_vm12, %v995_v20, %v997_v5  ;;  %v1002_v18 = vsel %vm490_vm12, %v997_v5, %v999_v15 }
 0x640   : > { %v2076_v32 = vsel %vm1040_vm2, %v1001_v33, %v992_v30  ;;  %v2078_v36 = vsel %vm1041_vm9, %v1002_v18, %v993_v31  ;;  %vm2233_vm2 = vmmov 0   ;;  %vm2234_vm9 = vcmask 7168  }
 0x641   : > { %1132 = vrot.lane.b32.xlu1 %v2076_v32, %s1738_s30  ;;  %1134 = vrot.lane.b32.xlu0 %v2078_v36, %s1738_s30  ;;  %v1050_v37 = vrot.slane %v2076_v32, 4  ;;  %v1051_v38 = vrot.slane %v2078_v36, 4 }
 0x642   : > { %v1137_v42 = vpop.permute.xlu1 %1136  ;;  %v1115_v43 = vpop.permute.xlu0 %1114 }
 0x645   : > { %1110 = vrot.lane.b32.xlu1 %v2076_v32, %s1741_s10  ;;  %1112 = vrot.lane.b32.xlu0 %v2078_v36, %s1741_s10 }
 0x646   : > { %v1126_v22 = vpop.permute.xlu1 %1125  ;;  %v1093_v44 = vpop.permute.xlu0 %1092 }
 0x649   : > { %1108 = vrot.lane.b32.xlu1 %v2066_v29, %s1741_s10  ;;  %1088 = vrot.lane.b32.xlu0 %v2076_v32, %s1739_s8 }
 0x64a   : > { %v1104_v45 = vpop.permute.xlu1 %1103 }
 0x64d   : > { %1090 = vrot.lane.b32.xlu1 %v2078_v36, %s1739_s8  ;;  %1086 = vrot.lane.b32.xlu0 %v2066_v29, %s1739_s8 }
 0x651   : > { %1068 = vrot.lane.b32.xlu1 %v2078_v36, %s1745_s13  ;;  %1066 = vrot.lane.b32.xlu0 %v2076_v32, %s1745_s13 }
 0x655   : > { %1121 = vrot.lane.b32.xlu1 %v1050_v37, %s1743_s11  ;;  %1064 = vrot.lane.b32.xlu0 %v2066_v29, %s1745_s13 }
 0x659   : > { %1101 = vrot.lane.b32.xlu1 %v1051_v38, %s1740_s9  ;;  %1123 = vrot.lane.b32.xlu0 %v1051_v38, %s1743_s11 }
 0x65d   : > { %1097 = vrot.lane.b32.xlu1 %v1049_v40, %s1740_s9  ;;  %1119 = vrot.lane.b32.xlu0 %v1049_v40, %s1743_s11  ;;  %s1659_s11 = smul.u32 24, %s2238_s25 }
 0x661   : > { %1079 = vrot.lane.b32.xlu1 %v1051_v38, %s1747_s14  ;;  %1099 = vrot.lane.b32.xlu0 %v1050_v37, %s1740_s9 }
 0x665   : > { %1075 = vrot.lane.b32.xlu1 %v1049_v40, %s1747_s14  ;;  %1077 = vrot.lane.b32.xlu0 %v1050_v37, %s1747_s14 }
 0x669   : > { %1057 = vrot.lane.b32.xlu1 %v1051_v38, %s1744_s12  ;;  %1055 = vrot.lane.b32.xlu0 %v1050_v37, %s1744_s12 }
 0x66d   : > { %1070 = vrot.lane.b32.xlu1 %v1746_v23, %s1745_s13  ;;  %1053 = vrot.lane.b32.xlu0 %v1049_v40, %s1744_s12 }
 0x671   : > { %1059 = vrot.lane.b32.xlu1 %v2030_v54, %s1744_s12  ;;  %1081 = vrot.lane.b32.xlu0 %v2030_v54, %s1747_s14  ;;  %s278_s14 = scalar_lea.vmem %s2209_s7, %s1659_s11 }
 0x675   : > { %1191 = vperm.xlu0 %1691, %v1857_v24  }
 0x679   : > { %1692 = vset.pattern.permute.xlu0 %v1746_v23 }
 0x6af   : > { %v1131_v46 = vpop.permute.xlu0 %1130 }
 0x6b3   : > { %v1135_v47 = vpop.permute.xlu0 %1134  ;;  %v1133_v48 = vpop.permute.xlu1 %1132 }
 0x6b4   : > { %v1140_v49 = vsel %vm429_vm1, %v1135_v47, %v1137_v42  ;;  %v1138_v50 = vsel %vm429_vm1, %v1131_v46, %v1133_v48  ;;  %v1139_v51 = vsel %vm429_vm1, %v1133_v48, %v1135_v47  ;;  %vm2221_vm1 = vcmask 891904  }
 0x6b5   : > { %v1205_v52 = vsel %vm443_vm7, %v1140_v49, 0  ;;  %v1199_v24 = vsel %vm443_vm7, %v1138_v50, 0  ;;  %1588 = vmatprep.subr.msk.bf16.mxu0 %vm443_vm7, %v1139_v51  ;;  %vm2222_vm12 = vmmov %vm2221_vm1  ;;  %v1189_v51 = vld [vmem:[%s2204_s2] sm:$0xf] }
 0x6b6   : > { %1214 = vmatpush1.bf16.msra.mxu0 %v1199_v24  ;;  %1636 = vmatpush3.bf16.msra.mxu1 %v1205_v52  ;;  %vm2223_vm8 = vmmov %vm2221_vm1 }
 0x6b7   : > { %v1113_v23 = vpop.permute.xlu0 %1112  ;;  %v1111_v53 = vpop.permute.xlu1 %1110  ;;  %1637 = vmatprep.subr.bf16.mxu1 %v1742_v17 }
 0x6b8   : > { %v1118_v0 = vsel %vm405_vm4, %v1113_v23, %v1115_v43  ;;  %v1117_v1 = vsel %vm405_vm4, %v1111_v53, %v1113_v23 }
 0x6bb   : > { %v1089_v54 = vpop.permute.xlu0 %1088  ;;  %v1109_v55 = vpop.permute.xlu1 %1108 }
 0x6bc   : > { %v1116_v14 = vsel %vm405_vm4, %v1109_v55, %v1111_v53  ;;  %vm2224_vm4 = vcmask 1031168  }
 0x6bd   : > { %vm2230_vm14 = vmmov %vm2224_vm4 }
 0x6bf   : > { %v1087_v56 = vpop.permute.xlu0 %1086  ;;  %v1091_v57 = vpop.permute.xlu1 %1090 }
 0x6c0   : > { %v1096_v16 = vsel %vm2221_vm1, %v1091_v57, %v1093_v44  ;;  %v1094_v27 = vsel %vm2222_vm12, %v1087_v56, %v1089_v54  ;;  %v1095_v28 = vsel %vm2223_vm8, %v1089_v54, %v1091_v57  ;;  %vm2235_vm1 = vcmask 64512  }
 0x6c1   : > { %vm2236_vm12 = vcmask 31744  }
 0x6c3   : > { %v1067_v58 = vpop.permute.xlu0 %1066  ;;  %v1069_v59 = vpop.permute.xlu1 %1068 }
 0x6c4   : > { %v1073_v37 = vsel %vm2224_vm4, %v1067_v58, %v1069_v59 }
 0x6c7   : > { %v1065_v60 = vpop.permute.xlu0 %1064  ;;  %v1122_v61 = vpop.permute.xlu1 %1121 }
 0x6cb   : > { %v1124_v62 = vpop.permute.xlu0 %1123  ;;  %v1102_v63 = vpop.permute.xlu1 %1101 }
 0x6cc   : > { %v1128_v2 = vsel %vm417_vm6, %v1122_v61, %v1124_v62  ;;  %v1129_v6 = vsel %vm417_vm6, %v1124_v62, %v1126_v22  ;;  %v1107_v10 = vsel %vm393_vm3, %v1102_v63, %v1104_v45 }
 0x6cd   : > { %v1183_v8 = vsel %vm443_vm7, %v1117_v1, %v1128_v2  ;;  %v1187_v9 = vsel %vm443_vm7, %v1118_v0, %v1129_v6  ;;  %v1175_v21 = vsel %vm443_vm7, %v1096_v16, %v1107_v10 }
 0x6ce   : > { %1215 = vmatprep.subr.bf16.mxu0 %v1183_v8  ;;  %1638 = vmatpush3.bf16.msra.mxu1 %v1187_v9 }
 0x6cf   : > { %v1120_v11 = vpop.permute.xlu0 %1119  ;;  %v1098_v12 = vpop.permute.xlu1 %1097  ;;  %1639 = vmatprep.subr.bf16.mxu1 %v1742_v17 }
 0x6d0   : > { %v1127_v19 = vsel %vm417_vm6, %v1120_v11, %v1122_v61  ;;  %vm2225_vm6 = vmmov %vm2224_vm4 }
 0x6d1   : > { %v1179_v20 = vsel %vm443_vm7, %v1116_v14, %v1127_v19  ;;  %v1072_v38 = vsel %vm2225_vm6, %v1065_v60, %v1067_v58 }
 0x6d2   : > { %1216 = vmatpush1.bf16.msra.mxu0 %v1179_v20  ;;  %1640 = vmatpush3.bf16.msra.mxu1 %v1175_v21  ;;  %v1308_v21 = vsub.s32 5, %v1807_v3 }
 0x6d3   : > { %v1100_v25 = vpop.permute.xlu0 %1099  ;;  %v1080_v26 = vpop.permute.xlu1 %1079  ;;  %1641 = vmatprep.subr.bf16.mxu1 %v1742_v17 }
 0x6d4   : > { %v1105_v5 = vsel %vm393_vm3, %v1098_v12, %v1100_v25  ;;  %v1106_v15 = vsel %vm393_vm3, %v1100_v25, %v1102_v63  ;;  %vm2228_vm3 = vcmask 1039360  }
 0x6d5   : > { %v1171_v30 = vsel %vm443_vm7, %v1095_v28, %v1106_v15  ;;  %v1167_v31 = vsel %vm443_vm7, %v1094_v27, %v1105_v5  ;;  %vm2229_vm13 = vmmov %vm2228_vm3  ;;  %v1309_v15 = vrot.slane %v1938_v7, %v1308_v21 }
 0x6d6   : > { %1217 = vmatprep.subr.bf16.mxu0 %v1171_v30  ;;  %vm2232_vm5 = vmmov %vm2228_vm3 }
 0x6d7   : > { %v1078_v33 = vpop.permute.xlu0 %1077  ;;  %1218 = vmatpush1.bf16.msra.mxu0 %v1167_v31  ;;  %v1076_v18 = vpop.permute.xlu1 %1075  ;;  %v1317_v31 = vrot.slane %v1947_v13, %v1308_v21 }
 0x6d8   : > { %v1084_v40 = vsel %vm2226_vm15, %v1078_v33, %v1080_v26  ;;  %v1083_v41 = vsel %vm2227_vm0, %v1076_v18, %v1078_v33 }
 0x6d9   : > { %v1159_v42 = vsel %vm443_vm7, %v1073_v37, %v1084_v40  ;;  %v1155_v43 = vsel %vm443_vm7, %v1072_v38, %v1083_v41 }
 0x6da   : > { %1219 = vmatprep.subr.bf16.mxu0 %v1159_v42 }
 0x6db   : > { %v1056_v22 = vpop.permute.xlu0 %1055  ;;  %1220 = vmatpush1.bf16.msra.mxu0 %v1155_v43  ;;  %v1058_v44 = vpop.permute.xlu1 %1057 }
 0x6dc   : > { %v1062_v45 = vsel %vm2228_vm3, %v1056_v22, %v1058_v44 }
 0x6dd   : > { %v1147_v46 = vsel %vm443_vm7, %v2076_v32, %v1062_v45 }
 0x6de   : > { %1221 = vmatprep.subr.bf16.mxu0 %v1147_v46 }
 0x6df   : > { %v1054_v47 = vpop.permute.xlu0 %1053  ;;  %v1071_v48 = vpop.permute.xlu1 %1070 }
 0x6e0   : > { %v1061_v49 = vsel %vm2229_vm13, %v1054_v47, %v1056_v22  ;;  %v1074_v32 = vsel %vm2230_vm14, %v1069_v59, %v1071_v48  ;;  %v1755_v48 = vmov 4  }
 0x6e1   : > { %v1143_v50 = vsel %vm443_vm7, %v2066_v29, %v1061_v49  ;;  %1693 = vset.pattern.permute.xlu1 %v1755_v48 }
 0x6e2   : > { %1222 = vmatpush1.bf16.msra.mxu0 %v1143_v50 }
 0x6e3   : > { %v1082_v52 = vpop.permute.xlu0 %1081  ;;  %v1060_v24 = vpop.permute.xlu1 %1059  ;;  %1649 = vmatprep.subr.mxu0 %v1742_v17 }
 0x6e4   : > { %v1085_v23 = vsel %vm2231_vm10, %v1080_v26, %v1082_v52  ;;  %v1063_v54 = vsel %vm2232_vm5, %v1058_v44, %v1060_v24  ;;  %v1313_v26 = vrot.slane %v1930_v4, %v1308_v21  ;;  %v1756_v52 = vmov 5  }
 0x6e5   : > { %1589 = vmatmul.mubr.msk.bf16.vlgmr.msra.gmra.mxu0 %vm1194_vm11, %v1189_v51  ;;  %v1163_v53 = vsel %vm443_vm7, %v1074_v32, %v1085_v23  ;;  %v1151_v29 = vsel %vm443_vm7, %v2078_v36, %v1063_v54 }
 0x6e6   : > { %1642 = vmatpush3.bf16.msra.mxu1 %v1163_v53  ;;  %1651 = vmatprep.mubr.msk.f32.mxu0 %vm2233_vm2, %v1742_v17 }
 0x6e7   : > { %1643 = vmatprep.subr.bf16.mxu1 %v1742_v17 }
 0x6ea   : > { %1644 = vmatpush3.bf16.msra.mxu1 %v1151_v29 }
 0x6eb   : > { %1654 = vmatprep.subr.mxu1 %v1742_v17 }
 0x6ed   : > { %1646 = vmatmul.mubr.msk.bf16.vlgmr.msra.gmra.mxu1 %vm1194_vm11, %v1189_v51 }
 0x6ee   : > { %1656 = vmatprep.mubr.msk.f32.mxu1 %vm2233_vm2, %v1742_v17 }
 0x6f0   : > { %v1192_v55 = vpop.permute.xlu0 %1191 }
 0x7a5   : > { %v1241_v56 = vpop.f32.mrf.mxu0 }
 0x7a6   : > { %v1242_v57 = vadd.f32 %v1241_v56, %v1192_v55 }
 0x7a7   : > { %v1243_v58 = vpop.f32.mrf.mxu0 }
 0x7a8   : > { %v1288_v59 = vsub.f32 0.0, %v1242_v57  ;;  %v1244_v60 = vadd.f32 %v1243_v58, %v1192_v55 }
 0x7a9   : > { %v1245_v61 = vpop.f32.mrf.mxu0 }
 0x7aa   : > { %v1291_v62 = vmul.f32 1.442695, %v1288_v59  ;;  %v1289_v63 = vsub.f32 0.0, %v1244_v60 }
 0x7ab   : > { %v1246_v0 = vpop.f32.mrf.mxu0 }
 0x7ac   : > { %1714 = vpow2.f32 %v1291_v62  ;;  %v1293_v1 = vmul.f32 1.442695, %v1289_v63 }
 0x7ad   : > { %v1282_v36 = vpop.f32.mrf.mxu1 }
 0x7ae   : > { %1716 = vpow2.f32 %v1293_v1  ;;  %v1283_v2 = vadd.f32 %v1282_v36, %v1192_v55 }
 0x7af   : > { %v1647_v6 = vpop.f32.mrf.mxu1 }
 0x7b0   : > { %v1290_v8 = vsub.f32 0.0, %v1283_v2 }
 0x7b1   : > { %v1285_v9 = vpop.f32.mrf.mxu1 }
 0x7b2   : > { %v1295_v10 = vmul.f32 1.442695, %v1290_v8 }
 0x7b3   : > { %v1648_v17 = vpop.f32.mrf.mxu1 }
 0x7b4   : > { %1718 = vpow2.f32 %v1295_v10 }
 0x7b9   : > { %v1715_v11 = vpop.eup %1714 }
 0x7ba   : > { %v1297_v12 = vadd.f32 1.0, %v1715_v11 }
 0x7bb   : > { %v1717_v14 = vpop.eup %1716 }
 0x7bc   : > { %1720 = vrcp.f32 %v1297_v12  ;;  %v1298_v16 = vadd.f32 1.0, %v1717_v14 }
 0x7be   : > { %1722 = vrcp.f32 %v1298_v16 }
 0x7c1   : > { %v1719_v19 = vpop.eup %1718 }
 0x7c2   : > { %v1299_v20 = vadd.f32 1.0, %v1719_v19 }
 0x7c4   : > { %1724 = vrcp.f32 %v1299_v20 }
 0x7c9   : > { %v1721_v25 = vpop.eup %1720 }
 0x7ca   : > { %v1303_v28 = vmul.f32 %v1721_v25, %v1242_v57 }
 0x7cb   : > { %v1723_v27 = vpop.eup %1722 }
 0x7cc   : > { %v1304_v5 = vmul.f32 %v1723_v27, %v1244_v60  ;;  %v1318_v33 = vmul.f32 %v1309_v15, %v1303_v28 }
 0x7ce   : > { %v1319_v30 = vmul.f32 %v1313_v26, %v1304_v5  ;;  %v1325_v42 = vmul.f32 %v1318_v33, %v1303_v28 }
 0x7d0   : > { %v1326_v38 = vmul.f32 %v1319_v30, %v1304_v5  ;;  %v1321_v41 = vadd.f32 %v1319_v30, %v1318_v33 }
 0x7d1   : > { %v1725_v18 = vpop.eup %1724 }
 0x7d2   : > { %v1305_v37 = vmul.f32 %v1725_v18, %v1283_v2  ;;  %v1328_v22 = vadd.f32 %v1326_v38, %v1325_v42 }
 0x7d4   : > { %v1320_v40 = vmul.f32 %v1317_v31, %v1305_v37 }
 0x7d6   : > { %v1322_v43 = vadd.f32 %v1321_v41, %v1320_v40  ;;  %v1327_v3 = vmul.f32 %v1320_v40, %v1305_v37 }
 0x7d8   : > { %1323 = vadd.xlane.f32.xlu1 %v1322_v43  ;;  %v1329_v4 = vadd.f32 %v1328_v22, %v1327_v3 }
 0x7da   : > { %1330 = vadd.xlane.f32.xlu0 %v1329_v4 }
 0x861   : > { %v1324_v44 = vpop.xlane.xlu1 %1323 }
 0x863   : > { %v1331_v45 = vpop.xlane.xlu0 %1330 }
 0x864   : > { %v1332_v7 = vsel %vm2234_vm9, %v1324_v44, %v1331_v45 }
 0x865   : > { %1650 = vmatpush3.msra.mxu0 %v1332_v7 }
 0x866   : > { %1652 = vmatmul.mubr.msk.f32.vlgmr.msra.gmra.mxu0 %vm2235_vm1, %v1954_v34  ;;  %v1728_v34 = vld [vmem:[%s2205_s3] sm:$0xff] }
 0x926   : > { %v1399_v13 = vpop.f32.mrf.mxu0 }
 0x927   : > { %1655 = vmatpush3.msk.msra.mxu1 %vm443_vm7, %v1399_v13 }
 0x928   : > { %v1653_v46 = vpop.f32.mrf.mxu0  ;;  %1657 = vmatmul.mubr.msk.f32.vlgmr.msra.gmra.mxu1 %vm2236_vm12, %v1963_v35 }
 0x9e8   : > { %v1472_v47 = vpop.f32.mrf.mxu1 }
 0x9e9   : > { %v1476_v49 = vmul.f32 0.001953125, %v1472_v47 }
 0x9ea   : > { %v1658_v50 = vpop.f32.mrf.mxu1 }
 0x9eb   : > { %1488 = vperm.xlu0 %1692, %v1476_v49   ;;  %v1477_v51 = vmul.f32 %v1476_v49, %v1476_v49 }
 0x9ed   : > { %1479 = vrot.lane.b32.xlu1 %v1477_v51, %s1750_s16 }
 0x9ef   : > { %1696 = vset.pattern.permute.xlu0 %v1756_v52 }
 0x9f1   : > { %1503 = vperm.xlu1 %1693, %v1728_v34  }
 0x9f5   : > { %1694 = vset.pattern.permute.xlu1 %v1749_v39 }
 0xa5f   : > { %v1480_v24 = vpop.permute.xlu1 %1479 }
 0xa60   : > { %v1482_v35 = vsub.f32 %v1476_v49, %v1480_v24 }
 0xa62   : > { %v1483_v32 = vmax.f32 %v1482_v35, 0.0 }
 0xa64   : > { %v1484_v23 = vadd.f32 1e-05, %v1483_v32 }
 0xa66   : > { %1726 = vrsqrt.f32 %v1484_v23  ;;  %v1489_v29 = vpop.permute.xlu0 %1488 }
 0xa67   : > { %v1491_v55 = vsub.f32 %v1303_v28, %v1489_v29  ;;  %v1492_v56 = vsub.f32 %v1304_v5, %v1489_v29  ;;  %v1493_v57 = vsub.f32 %v1305_v37, %v1489_v29 }
 0xa6c   : > { %v1504_v54 = vpop.permute.xlu1 %1503 }
 0xa73   : > { %v1727_v53 = vpop.eup %1726 }
 0xa74   : > { %1496 = vperm.xlu1 %1694, %v1727_v53  }
 0xa78   : > { %1695 = vset.pattern.permute.xlu1 %v1756_v52 }
 0xa79   : > { %1510 = vperm.xlu1 %1695, %v1728_v34  }
 0xaef   : > { %v1497_v58 = vpop.permute.xlu1 %1496 }
 0xaf0   : > { %v1499_v59 = vmul.f32 %v1497_v58, %v1491_v55  ;;  %v1500_v39 = vmul.f32 %v1497_v58, %v1492_v56  ;;  %v1501_v60 = vmul.f32 %v1497_v58, %v1493_v57 }
 0xaf2   : > { %v1506_v61 = vmul.f32 %v1504_v54, %v1499_v59  ;;  %v1507_v62 = vmul.f32 %v1504_v54, %v1500_v39  ;;  %v1508_v63 = vmul.f32 %v1504_v54, %v1501_v60 }
 0xaf4   : > { %v1511_v0 = vpop.permute.xlu1 %1510 }
 0xaf5   : > { %v1513_v1 = vadd.f32 %v1511_v0, %v1506_v61  ;;  %v1514_v36 = vadd.f32 %v1511_v0, %v1507_v62  ;;  %v1515_v2 = vadd.f32 %v1511_v0, %v1508_v63 }
 0xaf7   : > { %1516 = vst [vmem:[%s278_s14] sm:$0xff] %v1513_v1  ;;  %1517 = vst [vmem:[%s278_s14 + $0x8] sm:$0xff] %v1514_v36 }
 0xaf8   : > { %1518 = vst [vmem:[%s278_s14 + $0x10] sm:$0xff] %v1515_v2 }
 0xaf9 PF: > { %s17_s24 = sadd.s32 1, %s1735_s24  }
 0xafa   : > { %p14_p4 = scmp.ge.s32.totalorder %s17_s24, 4  }
 0xafc   :  { %16 = sbr.rel (!%p14_p4) target bundleno = 1 (0x1), region = 78 }

</bundles_post_ra>
